<compile_context>
chip_gen: v7x
topology: tpu7x:2x2x1
jax: 0.10.0
libtpu: 0.0.40
codegen_flags: <defaults>
</compile_context>

<pallas_src>
import functools

import jax
import jax.numpy as jnp
import numpy as np
from jax import lax
from jax.experimental import pallas as pl
from jax.experimental.pallas import tpu as pltpu


def _round_up(x, m):
    return (x + m - 1) // m * m


# ---------------------------------------------------------------------------
# Hardware-generation config
# ---------------------------------------------------------------------------
def _tpu_config():
    """Returns (mxu_m_target, vmem_budget_bytes, two_cores)."""
    kind = ""
    try:
        kind = jax.devices()[0].device_kind.lower()
    except Exception:
        pass
    vmem_cap = 128 << 20
    try:
        vmem_cap = int(pltpu.get_tpu_info().vmem_capacity_bytes)
    except Exception:
        if "7" in kind:
            vmem_cap = 64 << 20
    is_v7 = ("7" in kind) or (vmem_cap <= (64 << 20))
    is_small_mxu = ("v5" in kind) or ("v4" in kind)          # 128x128 MXU class
    mxu_m = 128 if is_small_mxu else 256
    # ~48 MiB on v7x (64 MiB physical), ~96 MiB on v5e/v6e (128 MiB physical).
    vmem_budget = min((48 << 20) if is_v7 else (96 << 20), vmem_cap * 3 // 4)
    vmem_budget = max(vmem_budget, 16 << 20)
    return mxu_m, int(vmem_budget), is_v7


# ---------------------------------------------------------------------------
# VMEM accounting helpers (double-buffering of Pallas-managed operands included)
# ---------------------------------------------------------------------------
def _phase1_block_bytes(tr, hp, cdt_size):
    return (2 * tr * hp * cdt_size            # x tile (double buffered)
            + 4 * hp * 3 * hp * cdt_size      # W_ih fwd/bwd (double buffered)
            + 4 * 8 * 3 * hp * 4              # biases (sublane padded)
            + 4 * tr * 3 * hp * cdt_size)     # gx_f / gx_b out tiles (double buffered)


def _phase2_block_bytes(T, tb, hp, cdt_size):
    return (4 * hp * 3 * hp * cdt_size        # resident W_hh fwd/bwd (double buffered)
            + 2 * T * tb * hp * 4             # out slab (double buffered)
            + 4 * tb * hp * 4                 # hidden out (double buffered)
            + 4 * tb * 3 * hp * cdt_size      # gx stream buffers (2 dirs x 2 slots)
            + 2 * tb * hp * 4                 # h_f / h_b scratch
            + 2 * tb * 128 * 4                # lengths block (lane padded)
            + 4 * 8 * hp * 4)                 # b_hn blocks


def _choose_batch_tile(T, B, Hp, cdt_size, mxu_m, vmem_budget, two_cores):
    b8 = _round_up(B, 8)
    tb = min(mxu_m, b8)
    if two_cores and b8 >= 16:
        # Make sure the phase-2 grid has >= 2 programs so both TensorCores work.
        tb = min(tb, _round_up((b8 + 1) // 2, 8))
    while tb > 8 and _phase2_block_bytes(T, tb, Hp, cdt_size) + (4 << 20) > vmem_budget:
        tb = max(8, tb // 2 // 8 * 8)
    # Rebalance so round_up(B, tb) wastes as little padded batch as possible.
    n_tiles = -(-b8 // tb)
    tb = _round_up(-(-b8 // n_tiles), 8)
    return tb


def _choose_row_tile(rows, Hp, cdt_size, mxu_m, vmem_budget):
    target = max(8, min(mxu_m, rows) // 8 * 8)
    best, d = 8, 8
    while d <= target:                          # at most ~32 python iterations
        if rows % d == 0:
            best = d
        d += 8
    # Prefer an exact divisor (no row-padding copy); fall back to the MXU target.
    tr = best if best >= min(64, target) else target
    while tr > 8 and _phase1_block_bytes(tr, Hp, cdt_size) + (2 << 20) > vmem_budget:
        tr = max(8, tr // 2 // 8 * 8)
    return tr


# ---------------------------------------------------------------------------
# Phase 1: hoisted input projection  gx = x @ W_ih + b_proj   (both directions)
# ---------------------------------------------------------------------------
def _proj_kernel(x_ref, wf_ref, wb_ref, bf_ref, bb_ref, gxf_ref, gxb_ref):
    x = x_ref[...]
    gf = jnp.dot(x, wf_ref[...], preferred_element_type=jnp.float32) + bf_ref[...]
    gb = jnp.dot(x, wb_ref[...], preferred_element_type=jnp.float32) + bb_ref[...]
    gxf_ref[...] = gf.astype(gxf_ref.dtype)
    gxb_ref[...] = gb.astype(gxb_ref.dtype)


def _input_projection(x2d, w_f, w_b, b_f, b_b, tile_rows, out_dtype, vmem_budget):
    r_pad, hp = x2d.shape
    n = w_f.shape[1]                                  # 3 * Hp
    cdt_size = x2d.dtype.itemsize
    vmem_limit = int(min(vmem_budget,
                         max(_phase1_block_bytes(tile_rows, hp, cdt_size) + (2 << 20),
                             16 << 20)))
    return pl.pallas_call(
        _proj_kernel,
        out_shape=(jax.ShapeDtypeStruct((r_pad, n), out_dtype),
                   jax.ShapeDtypeStruct((r_pad, n), out_dtype)),
        grid_spec=pltpu.PrefetchScalarGridSpec(
            num_scalar_prefetch=0,
            grid=(r_pad // tile_rows,),
            in_specs=[
                pl.BlockSpec((tile_rows, hp), lambda i: (i, 0)),
                pl.BlockSpec((hp, n), lambda i: (0, 0)),     # resident weights
                pl.BlockSpec((hp, n), lambda i: (0, 0)),
                pl.BlockSpec((1, n), lambda i: (0, 0)),
                pl.BlockSpec((1, n), lambda i: (0, 0)),
            ],
            out_specs=(pl.BlockSpec((tile_rows, n), lambda i: (i, 0)),
                       pl.BlockSpec((tile_rows, n), lambda i: (i, 0))),
        ),
        compiler_params=pltpu.CompilerParams(
            dimension_semantics=("parallel",),
            vmem_limit_bytes=vmem_limit),
    )(x2d, w_f, w_b, b_f, b_b)


# ---------------------------------------------------------------------------
# Phase 2: serial bidirectional GRU recurrence, gx streamed from HBM per step,
# forward/backward directions interleaved.
# ---------------------------------------------------------------------------
def _bigru_kernel(len_ref, gxf_hbm, gxb_hbm, whf_ref, whb_ref, bnf_ref, bnb_ref,
                  out_ref, hid_ref,
                  gxf_buf, gxb_buf, sem, hf_ref, hb_ref,
                  *, B_pad):
    T, TB, Hp = out_ref.shape
    cdt = whf_ref.dtype
    base = pl.program_id(0) * TB               # batch-row offset in the flat gx arrays

    # Hoisted once per batch tile (kept narrow; implicit broadcasting inside the loop
    # avoids materializing (TB, Hp) copies every step).
    len_col = len_ref[...]                      # (TB, 1) int32
    bhn_f = bnf_ref[...]                        # (1, Hp) f32
    bhn_b = bnb_ref[...]
    zero_row = jnp.zeros((TB, Hp), jnp.float32)

    hf_ref[...] = jnp.zeros_like(hf_ref)        # h0 = 0 (hidden=None)
    hb_ref[...] = jnp.zeros_like(hb_ref)

    def fetch(slot, t_f, t_b):
        rf = pl.multiple_of(t_f * B_pad + base, 8)
        rb = pl.multiple_of(t_b * B_pad + base, 8)
        pltpu.make_async_copy(gxf_hbm.at[pl.ds(rf, TB)], gxf_buf.at[slot],
                              sem.at[0, slot]).start()
        pltpu.make_async_copy(gxb_hbm.at[pl.ds(rb, TB)], gxb_buf.at[slot],
                              sem.at[1, slot]).start()

    fetch(0, 0, T - 1)                          # prime slot 0 (overlaps the init below)

    # Zero-init the output slab once so both directions can accumulate in any order.
    @pl.loop(0, T)
    def _(t):
        out_ref[t] = zero_row

    def gates(gx, gh, bhn, h_prev, m):
        # sigmoid(x) == 0.5*tanh(0.5*x)+0.5  -> one EUP push per gate instead of two.
        r = 0.5 * jnp.tanh(0.5 * (gx[:, 0:Hp] + gh[:, 0:Hp])) + 0.5
        z = 0.5 * jnp.tanh(0.5 * (gx[:, Hp:2 * Hp] + gh[:, Hp:2 * Hp])) + 0.5
        n = jnp.tanh(gx[:, 2 * Hp:] + r * (gh[:, 2 * Hp:] + bhn))
        h_new = (1.0 - z) * n + z * h_prev
        return jnp.where(m, h_new, h_prev)      # padded steps keep h

    @pl.loop(0, T)
    def _(i):
        slot = i & 1
        tf = i
        tb = T - 1 - i

        # Wait for this step's gx chunks (shape/sem must match the started copies).
        pltpu.make_async_copy(gxf_hbm.at[pl.ds(0, TB)], gxf_buf.at[slot],
                              sem.at[0, slot]).wait()
        pltpu.make_async_copy(gxb_hbm.at[pl.ds(0, TB)], gxb_buf.at[slot],
                              sem.at[1, slot]).wait()

        @pl.when(i + 1 < T)
        def _():
            fetch(1 - slot, i + 1, tb - 1)      # prefetch next step for both dirs

        h_f_prev = hf_ref[...]
        h_b_prev = hb_ref[...]
        # Two independent recurrent matmuls issued back-to-back: the MXU works on one
        # direction while the VPU/EUP run the other direction's gate math.
        gh_f = jnp.dot(h_f_prev.astype(cdt), whf_ref[...],
                       preferred_element_type=jnp.float32)
        gh_b = jnp.dot(h_b_prev.astype(cdt), whb_ref[...],
                       preferred_element_type=jnp.float32)
        gx_f = gxf_buf[slot].astype(jnp.float32)
        gx_b = gxb_buf[slot].astype(jnp.float32)

        m_f = tf < len_col                      # (TB, 1) bool
        m_b = tb < len_col
        h_f = gates(gx_f, gh_f, bhn_f, h_f_prev, m_f)
        h_b = gates(gx_b, gh_b, bhn_b, h_b_prev, m_b)
        hf_ref[...] = h_f
        hb_ref[...] = h_b
        out_ref[tf] = out_ref[tf] + jnp.where(m_f, h_f, 0.0)   # packed output 0 at pad
        out_ref[tb] = out_ref[tb] + jnp.where(m_b, h_b, 0.0)

    hid_ref[0] = hf_ref[...]
    hid_ref[1] = hb_ref[...]


# ---------------------------------------------------------------------------
# Wrapper
# ---------------------------------------------------------------------------
def encoder_rnn_forward(input_seq, input_lengths, params, hidden_size,
                        compute_dtype=jnp.float32):
    """input_seq: (T, B) int32 token ids; input_lengths: (B,) valid lengths (sorted desc).

    Returns (outputs (T,B,H) = fwd+bwd sum, hidden (2,B,H)), matching
    EncoderRNN.forward with hidden=None, n_layers=1.
    """
    T, B = input_seq.shape
    H = hidden_size
    Hp = _round_up(H, 128)                       # lane-aligned hidden width
    cdt = jnp.dtype(compute_dtype)
    cdt_size = cdt.itemsize
    mxu_m, vmem_budget, two_cores = _tpu_config()

    TB = _choose_batch_tile(T, B, Hp, cdt_size, mxu_m, vmem_budget, two_cores)
    B_pad = _round_up(_round_up(B, 8), TB)

    # ---- glue: embedding gather + zero padding to aligned shapes ----
    emb = jnp.take(params["embedding"], input_seq, axis=0)                 # (T, B, H)
    emb = jnp.pad(emb, ((0, 0), (0, B_pad - B), (0, Hp - H)))
    lengths = jnp.pad(input_lengths.astype(jnp.int32), (0, B_pad - B))[:, None]

    # ---- pad weights per gate block ([r|z|n] on the last axis), fold biases ----
    def pad_gate_mat(w):                                                   # (H,3H)->(Hp,3Hp)
        return jnp.pad(w.reshape(H, 3, H),
                       ((0, Hp - H), (0, 0), (0, Hp - H))).reshape(Hp, 3 * Hp)

    def pad_gate_vec(b):                                                   # (1,3H)->(1,3,Hp)
        return jnp.pad(b.reshape(1, 3, H), ((0, 0), (0, 0), (0, Hp - H)))

    def fold_bias(b_ih, b_hh):
        bi, bh = pad_gate_vec(b_ih), pad_gate_vec(b_hh)
        # r/z recurrent biases fold into the projection bias; b_hn stays separate
        # (it is multiplied by r inside the cell).
        b_proj = jnp.concatenate([bi[:, 0] + bh[:, 0],
                                  bi[:, 1] + bh[:, 1],
                                  bi[:, 2]], axis=-1)                      # (1, 3Hp) f32
        return b_proj, bh[:, 2]                                            # (1, Hp) f32

    b_proj_f, b_hn_f = fold_bias(params["b_ih_f"], params["b_hh_f"])
    b_proj_b, b_hn_b = fold_bias(params["b_ih_b"], params["b_hh_b"])
    w_ih_f = pad_gate_mat(params["w_ih_f"]).astype(cdt)
    w_ih_b = pad_gate_mat(params["w_ih_b"]).astype(cdt)
    w_hh_f = pad_gate_mat(params["w_hh_f"]).astype(cdt)
    w_hh_b = pad_gate_mat(params["w_hh_b"]).astype(cdt)

    # ---- phase 1: one big pipelined matmul for the input projections ----
    rows = T * B_pad
    TR = _choose_row_tile(rows, Hp, cdt_size, mxu_m, vmem_budget)
    R_pad = _round_up(rows, TR)
    x2d = emb.reshape(rows, Hp)
    if R_pad != rows:
        x2d = jnp.pad(x2d, ((0, R_pad - rows), (0, 0)))
    x2d = x2d.astype(cdt)
    # gx_f/gx_b: flat (R_pad, 3*Hp) in compute_dtype; row = t*B_pad + b.  Consumed
    # directly by phase 2 via manual DMA (no slice/reshape copy between kernels).
    gx_f, gx_b = _input_projection(x2d, w_ih_f, w_ih_b, b_proj_f, b_proj_b,
                                   TR, cdt, vmem_budget)

    # ---- phase 2: serial bidirectional recurrence, grid over batch tiles ----
    vmem_limit = int(min(vmem_budget,
                         max(_phase2_block_bytes(T, TB, Hp, cdt_size) + (4 << 20),
                             16 << 20)))
    kernel = functools.partial(_bigru_kernel, B_pad=B_pad)

    outputs, hidden = pl.pallas_call(
        kernel,
        out_shape=(jax.ShapeDtypeStruct((T, B_pad, Hp), jnp.float32),
                   jax.ShapeDtypeStruct((2, B_pad, Hp), jnp.float32)),
        grid_spec=pltpu.PrefetchScalarGridSpec(
            num_scalar_prefetch=0,
            grid=(B_pad // TB,),
            in_specs=[
                pl.BlockSpec((TB, 1), lambda b: (b, 0)),              # lengths
                pl.BlockSpec(memory_space=pl.ANY),                    # gx_f (HBM, streamed)
                pl.BlockSpec(memory_space=pl.ANY),                    # gx_b (HBM, streamed)
                pl.BlockSpec((Hp, 3 * Hp), lambda b: (0, 0)),         # W_hh_f (resident)
                pl.BlockSpec((Hp, 3 * Hp), lambda b: (0, 0)),         # W_hh_b (resident)
                pl.BlockSpec((1, Hp), lambda b: (0, 0)),              # b_hn_f
                pl.BlockSpec((1, Hp), lambda b: (0, 0)),              # b_hn_b
            ],
            out_specs=(pl.BlockSpec((T, TB, Hp), lambda b: (0, b, 0)),
                       pl.BlockSpec((2, TB, Hp), lambda b: (0, b, 0))),
            scratch_shapes=[
                pltpu.VMEM((2, TB, 3 * Hp), cdt),      # gx_f stream double buffer
                pltpu.VMEM((2, TB, 3 * Hp), cdt),      # gx_b stream double buffer
                pltpu.SemaphoreType.DMA((2, 2)),       # [direction, slot]
                pltpu.VMEM((TB, Hp), jnp.float32),     # h_f
                pltpu.VMEM((TB, Hp), jnp.float32),     # h_b
            ],
        ),
        compiler_params=pltpu.CompilerParams(
            dimension_semantics=("parallel",),
            vmem_limit_bytes=vmem_limit),
    )(lengths, gx_f, gx_b, w_hh_f, w_hh_b, b_hn_f, b_hn_b)

    return outputs[:, :B, :H], hidden[:, :B, :H]


# ---------------------------------------------------------------------------
# Parameters + pure-JAX reference (packed-sequence semantics)
# ---------------------------------------------------------------------------
def init_params(key, vocab_size, hidden_size):
    H = hidden_size
    k = jax.random.split(key, 9)
    s = 1.0 / np.sqrt(H)
    u = lambda kk, shape: jax.random.uniform(kk, shape, jnp.float32, -s, s)
    return {
        "embedding": jax.random.normal(k[0], (vocab_size, H), jnp.float32),
        "w_ih_f": u(k[1], (H, 3 * H)),
        "w_hh_f": u(k[2], (H, 3 * H)),
        "b_ih_f": u(k[3], (1, 3 * H)),
        "b_hh_f": u(k[4], (1, 3 * H)),
        "w_ih_b": u(k[5], (H, 3 * H)),
        "w_hh_b": u(k[6], (H, 3 * H)),
        "b_ih_b": u(k[7], (1, 3 * H)),
        "b_hh_b": u(k[8], (1, 3 * H)),
    }


def reference_forward(input_seq, input_lengths, params, H):
    emb = jnp.take(params["embedding"], input_seq, axis=0)
    T, B = input_seq.shape
    mask = (jnp.arange(T)[:, None] < input_lengths[None, :]).astype(jnp.float32)[:, :, None]

    def cell(x, h, w_ih, w_hh, b_ih, b_hh):
        gx = x @ w_ih + b_ih
        gh = h @ w_hh + b_hh
        r = jax.nn.sigmoid(gx[:, :H] + gh[:, :H])
        z = jax.nn.sigmoid(gx[:, H:2 * H] + gh[:, H:2 * H])
        n = jnp.tanh(gx[:, 2 * H:] + r * gh[:, 2 * H:])
        return (1.0 - z) * n + z * h

    def make_step(sfx):
        def step(h, inp):
            x, m = inp
            h_new = cell(x, h, params["w_ih_" + sfx], params["w_hh_" + sfx],
                         params["b_ih_" + sfx], params["b_hh_" + sfx])
            h = m * h_new + (1.0 - m) * h
            return h, m * h
        return step

    h0 = jnp.zeros((B, H), jnp.float32)
    hf, out_f = lax.scan(make_step("f"), h0, (emb, mask))
    hb, out_b_rev = lax.scan(make_step("b"), h0, (emb[::-1], mask[::-1]))
    outputs = out_f + out_b_rev[::-1]
    hidden = jnp.stack([hf, hb], axis=0)
    return outputs, hidden


if __name__ == "__main__":
    key = jax.random.PRNGKey(0)
    vocab, H = 20, 32
    T, B = 8, 2

    kp, ki = jax.random.split(key)
    params = init_params(kp, vocab, H)
    input_seq = jax.random.randint(ki, (T, B), 0, vocab, dtype=jnp.int32)
    input_lengths = jnp.array([8, 5], dtype=jnp.int32)  # decreasing (enforce_sorted=True)

    fwd = jax.jit(encoder_rnn_forward, static_argnums=(3, 4))

    # f32 path (default): tight check against the pure-JAX reference.
    outputs, hidden = fwd(input_seq, input_lengths, params, H, jnp.float32)
    jax.block_until_ready((outputs, hidden))
    assert outputs.shape == (T, B, H) and hidden.shape == (2, B, H)
    ref_out, ref_hid = reference_forward(input_seq, input_lengths, params, H)
    np.testing.assert_allclose(np.asarray(outputs), np.asarray(ref_out), atol=2e-3, rtol=2e-3)
    np.testing.assert_allclose(np.asarray(hidden), np.asarray(ref_hid), atol=2e-3, rtol=2e-3)

    # bf16 compute path (halved gx HBM traffic): loose sanity check.
    out16, hid16 = fwd(input_seq, input_lengths, params, H, jnp.bfloat16)
    jax.block_until_ready((out16, hid16))
    np.testing.assert_allclose(np.asarray(out16), np.asarray(ref_out), atol=1e-1, rtol=1e-1)
    np.testing.assert_allclose(np.asarray(hid16), np.asarray(ref_hid), atol=1e-1, rtol=1e-1)

    print("KERNEL_OK")
</pallas_src>

<mosaic_0001>
module attributes {stable_mosaic.version = 11 : i64} {
  func.func @_proj_kernel(%arg0: i32, %arg1: memref<64x128xf32, #tpu.memory_space<vmem>>, %arg2: memref<128x384xf32, #tpu.memory_space<vmem>>, %arg3: memref<128x384xf32, #tpu.memory_space<vmem>>, %arg4: memref<1x384xf32, #tpu.memory_space<vmem>>, %arg5: memref<1x384xf32, #tpu.memory_space<vmem>>, %arg6: memref<64x384xf32, #tpu.memory_space<vmem>>, %arg7: memref<64x384xf32, #tpu.memory_space<vmem>>) attributes {dimension_semantics = [#tpu.dimension_semantics<parallel>], iteration_bounds = array<i64: 1>, scalar_prefetch = 0 : i64, scratch_operands = 0 : i64, tpu.core_type = #tpu.core_type<tc>, window_params = [{transform_indices = @transform_0, window_bounds = array<i64: 64, 128>}, {pipeline_mode = #tpu.pipeline_mode<synchronous>, transform_indices = @transform_1, window_bounds = array<i64: 128, 384>}, {pipeline_mode = #tpu.pipeline_mode<synchronous>, transform_indices = @transform_2, window_bounds = array<i64: 128, 384>}, {pipeline_mode = #tpu.pipeline_mode<synchronous>, transform_indices = @transform_3, window_bounds = array<i64: 1, 384>}, {pipeline_mode = #tpu.pipeline_mode<synchronous>, transform_indices = @transform_4, window_bounds = array<i64: 1, 384>}, {transform_indices = @transform_5, window_bounds = array<i64: 64, 384>}, {transform_indices = @transform_6, window_bounds = array<i64: 64, 384>}]} {
    %c0 = arith.constant 0 : index
    %c0_0 = arith.constant 0 : index
    %0 = vector.load %arg1[%c0, %c0_0] : memref<64x128xf32, #tpu.memory_space<vmem>>, vector<64x128xf32>
    %c0_1 = arith.constant 0 : index
    %c0_2 = arith.constant 0 : index
    %1 = vector.load %arg2[%c0_1, %c0_2] : memref<128x384xf32, #tpu.memory_space<vmem>>, vector<128x384xf32>
    %cst = arith.constant dense<0.000000e+00> : vector<64x384xf32>
    %2 = tpu.matmul %0, %1, %cst {dimension_numbers = #tpu.dot_dimension_numbers<[1], [0], [0], [1], [0, 0, 1, 1], [], []>} : vector<64x128xf32>, vector<128x384xf32>, vector<64x384xf32> -> vector<64x384xf32>
    %c0_3 = arith.constant 0 : index
    %c0_4 = arith.constant 0 : index
    %3 = vector.load %arg4[%c0_3, %c0_4] : memref<1x384xf32, #tpu.memory_space<vmem>>, vector<1x384xf32>
    %4 = vector.broadcast %3 : vector<1x384xf32> to vector<64x384xf32>
    %5 = arith.addf %2, %4 : vector<64x384xf32>
    %c0_5 = arith.constant 0 : index
    %c0_6 = arith.constant 0 : index
    %6 = vector.load %arg3[%c0_5, %c0_6] : memref<128x384xf32, #tpu.memory_space<vmem>>, vector<128x384xf32>
    %cst_7 = arith.constant dense<0.000000e+00> : vector<64x384xf32>
    %7 = tpu.matmul %0, %6, %cst_7 {dimension_numbers = #tpu.dot_dimension_numbers<[1], [0], [0], [1], [0, 0, 1, 1], [], []>} : vector<64x128xf32>, vector<128x384xf32>, vector<64x384xf32> -> vector<64x384xf32>
    %c0_8 = arith.constant 0 : index
    %c0_9 = arith.constant 0 : index
    %8 = vector.load %arg5[%c0_8, %c0_9] : memref<1x384xf32, #tpu.memory_space<vmem>>, vector<1x384xf32>
    %9 = vector.broadcast %8 : vector<1x384xf32> to vector<64x384xf32>
    %10 = arith.addf %7, %9 : vector<64x384xf32>
    %c0_10 = arith.constant 0 : index
    %c0_11 = arith.constant 0 : index
    %11 = vector.load %arg6[%c0_10, %c0_11] : memref<64x384xf32, #tpu.memory_space<vmem>>, vector<64x384xf32>
    tpu.vector_store %arg6[%c0_10, %c0_11], %5 {strides = array<i32>} : memref<64x384xf32, #tpu.memory_space<vmem>>, vector<64x384xf32>,
    %c0_12 = arith.constant 0 : index
    %c0_13 = arith.constant 0 : index
    %12 = vector.load %arg7[%c0_12, %c0_13] : memref<64x384xf32, #tpu.memory_space<vmem>>, vector<64x384xf32>
    tpu.vector_store %arg7[%c0_12, %c0_13], %10 {strides = array<i32>} : memref<64x384xf32, #tpu.memory_space<vmem>>, vector<64x384xf32>,
    return
  }
  func.func @transform_0(%arg0: i32) -> (i32, i32) {
    %c0_i32 = arith.constant 0 : i32
    %c0_i32_0 = arith.constant 0 : i32
    return %arg0, %c0_i32 : i32, i32
  }
  func.func @transform_1(%arg0: i32) -> (i32, i32) {
    %c0_i32 = arith.constant 0 : i32
    %c0_i32_0 = arith.constant 0 : i32
    %c0_i32_1 = arith.constant 0 : i32
    return %c0_i32, %c0_i32_0 : i32, i32
  }
  func.func @transform_2(%arg0: i32) -> (i32, i32) {
    %c0_i32 = arith.constant 0 : i32
    %c0_i32_0 = arith.constant 0 : i32
    %c0_i32_1 = arith.constant 0 : i32
    return %c0_i32, %c0_i32_0 : i32, i32
  }
  func.func @transform_3(%arg0: i32) -> (i32, i32) {
    %c0_i32 = arith.constant 0 : i32
    %c0_i32_0 = arith.constant 0 : i32
    %c0_i32_1 = arith.constant 0 : i32
    return %c0_i32, %c0_i32_0 : i32, i32
  }
  func.func @transform_4(%arg0: i32) -> (i32, i32) {
    %c0_i32 = arith.constant 0 : i32
    %c0_i32_0 = arith.constant 0 : i32
    %c0_i32_1 = arith.constant 0 : i32
    return %c0_i32, %c0_i32_0 : i32, i32
  }
  func.func @transform_5(%arg0: i32) -> (i32, i32) {
    %c0_i32 = arith.constant 0 : i32
    %c0_i32_0 = arith.constant 0 : i32
    return %arg0, %c0_i32 : i32, i32
  }
  func.func @transform_6(%arg0: i32) -> (i32, i32) {
    %c0_i32 = arith.constant 0 : i32
    %c0_i32_0 = arith.constant 0 : i32
    return %arg0, %c0_i32 : i32, i32
  }
}

module attributes {stable_mosaic.version = 11 : i64} {
  func.func @_bigru_kernel(%arg0: i32, %arg1: memref<8x1xi32, #tpu.memory_space<vmem>>, %arg2: memref<64x384xf32, #tpu.memory_space<any>>, %arg3: memref<64x384xf32, #tpu.memory_space<any>>, %arg4: memref<128x384xf32, #tpu.memory_space<vmem>>, %arg5: memref<128x384xf32, #tpu.memory_space<vmem>>, %arg6: memref<1x128xf32, #tpu.memory_space<vmem>>, %arg7: memref<1x128xf32, #tpu.memory_space<vmem>>, %arg8: memref<8x8x128xf32, #tpu.memory_space<vmem>>, %arg9: memref<2x8x128xf32, #tpu.memory_space<vmem>>, %arg10: memref<2x8x384xf32, #tpu.memory_space<vmem>>, %arg11: memref<2x8x384xf32, #tpu.memory_space<vmem>>, %arg12: memref<2x2x!tpu.dma_semaphore, #tpu.memory_space<semaphore_mem>>, %arg13: memref<8x128xf32, #tpu.memory_space<vmem>>, %arg14: memref<8x128xf32, #tpu.memory_space<vmem>>) attributes {dimension_semantics = [#tpu.dimension_semantics<parallel>], iteration_bounds = array<i64: 1>, scalar_prefetch = 0 : i64, scratch_operands = 5 : i64, tpu.core_type = #tpu.core_type<tc>, window_params = [{transform_indices = @transform_0, window_bounds = array<i64: 8, 1>}, {}, {}, {pipeline_mode = #tpu.pipeline_mode<synchronous>, transform_indices = @transform_3, window_bounds = array<i64: 128, 384>}, {pipeline_mode = #tpu.pipeline_mode<synchronous>, transform_indices = @transform_4, window_bounds = array<i64: 128, 384>}, {pipeline_mode = #tpu.pipeline_mode<synchronous>, transform_indices = @transform_5, window_bounds = array<i64: 1, 128>}, {pipeline_mode = #tpu.pipeline_mode<synchronous>, transform_indices = @transform_6, window_bounds = array<i64: 1, 128>}, {transform_indices = @transform_7, window_bounds = array<i64: 8, 8, 128>}, {transform_indices = @transform_8, window_bounds = array<i64: 2, 8, 128>}]} {
    %c8_i32 = arith.constant 8 : i32
    %0 = arith.muli %arg0, %c8_i32 : i32
    %c0 = arith.constant 0 : index
    %c0_0 = arith.constant 0 : index
    %1 = vector.load %arg1[%c0, %c0_0] : memref<8x1xi32, #tpu.memory_space<vmem>>, vector<8x1xi32>
    %c0_1 = arith.constant 0 : index
    %c0_2 = arith.constant 0 : index
    %2 = vector.load %arg6[%c0_1, %c0_2] : memref<1x128xf32, #tpu.memory_space<vmem>>, vector<1x128xf32>
    %c0_3 = arith.constant 0 : index
    %c0_4 = arith.constant 0 : index
    %3 = vector.load %arg7[%c0_3, %c0_4] : memref<1x128xf32, #tpu.memory_space<vmem>>, vector<1x128xf32>
    %cst = arith.constant 0.000000e+00 : f32
    %4 = vector.broadcast %cst : f32 to vector<8x128xf32>
    %cst_5 = arith.constant 0.000000e+00 : f32
    %5 = vector.broadcast %cst_5 : f32 to vector<8x128xf32>
    %c0_6 = arith.constant 0 : index
    %c0_7 = arith.constant 0 : index
    %6 = vector.load %arg13[%c0_6, %c0_7] : memref<8x128xf32, #tpu.memory_space<vmem>>, vector<8x128xf32>
    tpu.vector_store %arg13[%c0_6, %c0_7], %5 {strides = array<i32>} : memref<8x128xf32, #tpu.memory_space<vmem>>, vector<8x128xf32>,
    %cst_8 = arith.constant 0.000000e+00 : f32
    %7 = vector.broadcast %cst_8 : f32 to vector<8x128xf32>
    %c0_9 = arith.constant 0 : index
    %c0_10 = arith.constant 0 : index
    %8 = vector.load %arg14[%c0_9, %c0_10] : memref<8x128xf32, #tpu.memory_space<vmem>>, vector<8x128xf32>
    tpu.vector_store %arg14[%c0_9, %c0_10], %7 {strides = array<i32>} : memref<8x128xf32, #tpu.memory_space<vmem>>, vector<8x128xf32>,
    %c0_i32 = arith.constant 0 : i32
    %9 = arith.addi %c0_i32, %0 : i32
    %10 = tpu.assume_multiple %9, 8 : i32
    %c56_i32 = arith.constant 56 : i32
    %11 = arith.addi %c56_i32, %0 : i32
    %12 = tpu.assume_multiple %11, 8 : i32
    %c0_i32_11 = arith.constant 0 : i32
    %c0_i32_12 = arith.constant 0 : i32
    %c0_i32_13 = arith.constant 0 : i32
    %c0_i32_14 = arith.constant 0 : i32
    %13 = tpu.memref_slice %arg2[%10, %c0_i32_14] : memref<64x384xf32, #tpu.memory_space<any>> -> memref<8x384xf32, #tpu.memory_space<any>>
    %c0_i32_15 = arith.constant 0 : i32
    %c0_i32_16 = arith.constant 0 : i32
    %14 = tpu.memref_slice %arg10[%c0_i32_11, %c0_i32_15, %c0_i32_16] : memref<2x8x384xf32, #tpu.memory_space<vmem>> -> memref<1x8x384xf32, #tpu.memory_space<vmem>>
    %15 = tpu.memref_squeeze %14 : memref<1x8x384xf32, #tpu.memory_space<vmem>> -> memref<8x384xf32, #tpu.memory_space<vmem>>
    %16 = tpu.memref_slice %arg12[%c0_i32_12, %c0_i32_13] : memref<2x2x!tpu.dma_semaphore, #tpu.memory_space<semaphore_mem>> -> memref<1x1x!tpu.dma_semaphore, #tpu.memory_space<semaphore_mem>>
    %17 = tpu.memref_squeeze %16 : memref<1x1x!tpu.dma_semaphore, #tpu.memory_space<semaphore_mem>> -> memref<!tpu.dma_semaphore, #tpu.memory_space<semaphore_mem>>
    tpu.enqueue_dma source(%13 : memref<8x384xf32, #tpu.memory_space<any>>) target(%15 : memref<8x384xf32, #tpu.memory_space<vmem>>) target_semaphore(%17 : memref<!tpu.dma_semaphore, #tpu.memory_space<semaphore_mem>>)
    %c0_i32_17 = arith.constant 0 : i32
    %c1_i32 = arith.constant 1 : i32
    %c0_i32_18 = arith.constant 0 : i32
    %c0_i32_19 = arith.constant 0 : i32
    %18 = tpu.memref_slice %arg3[%12, %c0_i32_19] : memref<64x384xf32, #tpu.memory_space<any>> -> memref<8x384xf32, #tpu.memory_space<any>>
    %c0_i32_20 = arith.constant 0 : i32
    %c0_i32_21 = arith.constant 0 : i32
    %19 = tpu.memref_slice %arg11[%c0_i32_17, %c0_i32_20, %c0_i32_21] : memref<2x8x384xf32, #tpu.memory_space<vmem>> -> memref<1x8x384xf32, #tpu.memory_space<vmem>>
    %20 = tpu.memref_squeeze %19 : memref<1x8x384xf32, #tpu.memory_space<vmem>> -> memref<8x384xf32, #tpu.memory_space<vmem>>
    %21 = tpu.memref_slice %arg12[%c1_i32, %c0_i32_18] : memref<2x2x!tpu.dma_semaphore, #tpu.memory_space<semaphore_mem>> -> memref<1x1x!tpu.dma_semaphore, #tpu.memory_space<semaphore_mem>>
    %22 = tpu.memref_squeeze %21 : memref<1x1x!tpu.dma_semaphore, #tpu.memory_space<semaphore_mem>> -> memref<!tpu.dma_semaphore, #tpu.memory_space<semaphore_mem>>
    tpu.enqueue_dma source(%18 : memref<8x384xf32, #tpu.memory_space<any>>) target(%20 : memref<8x384xf32, #tpu.memory_space<vmem>>) target_semaphore(%22 : memref<!tpu.dma_semaphore, #tpu.memory_space<semaphore_mem>>)
    %c0_i32_22 = arith.constant 0 : i32
    %c8_i32_23 = arith.constant 8 : i32
    %23 = arith.addi %c0_i32_22, %c8_i32_23 : i32
    %c1_i32_24 = arith.constant 1 : i32
    scf.for %arg15 = %c0_i32_22 to %23 step %c1_i32_24  : i32 {
      %c1_i32_39 = arith.constant 1 : i32
      %33 = arith.muli %arg15, %c1_i32_39 : i32
      %c0_i32_40 = arith.constant 0 : i32
      %34 = arith.addi %c0_i32_40, %33 : i32
      %35 = arith.index_cast %34 : i32 to index
      %c0_41 = arith.constant 0 : index
      %c0_42 = arith.constant 0 : index
      %36 = vector.load %arg8[%35, %c0_41, %c0_42] : memref<8x8x128xf32, #tpu.memory_space<vmem>>, vector<1x8x128xf32>
      %37 = vector.shape_cast %36 : vector<1x8x128xf32> to vector<8x128xf32>
      %38 = vector.shape_cast %4 : vector<8x128xf32> to vector<1x8x128xf32>
      tpu.vector_store %arg8[%35, %c0_41, %c0_42], %38 {strides = array<i32>} : memref<8x8x128xf32, #tpu.memory_space<vmem>>, vector<1x8x128xf32>,
    }
    %c8_i32_25 = arith.constant 8 : i32
    %c0_i32_26 = arith.constant 0 : i32
    %c8_i32_27 = arith.constant 8 : i32
    %24 = arith.addi %c0_i32_26, %c8_i32_27 : i32
    %c1_i32_28 = arith.constant 1 : i32
    scf.for %arg15 = %c0_i32_26 to %24 step %c1_i32_28  : i32 {
      %c1_i32_39 = arith.constant 1 : i32
      %33 = arith.muli %arg15, %c1_i32_39 : i32
      %c0_i32_40 = arith.constant 0 : i32
      %34 = arith.addi %c0_i32_40, %33 : i32
      %c1_i32_41 = arith.constant 1 : i32
      %35 = arith.andi %34, %c1_i32_41 : i32
      %c7_i32 = arith.constant 7 : i32
      %36 = arith.subi %c7_i32, %34 : i32
      %c0_i32_42 = arith.constant 0 : i32
      %c0_i32_43 = arith.constant 0 : i32
      %c0_i32_44 = arith.constant 0 : i32
      %37 = tpu.memref_slice %arg2[%c0_i32_43, %c0_i32_44] : memref<64x384xf32, #tpu.memory_space<any>> -> memref<8x384xf32, #tpu.memory_space<any>>
      %c0_i32_45 = arith.constant 0 : i32
      %c0_i32_46 = arith.constant 0 : i32
      %38 = tpu.memref_slice %arg10[%35, %c0_i32_45, %c0_i32_46] : memref<2x8x384xf32, #tpu.memory_space<vmem>> -> memref<1x8x384xf32, #tpu.memory_space<vmem>>
      %39 = tpu.memref_squeeze %38 : memref<1x8x384xf32, #tpu.memory_space<vmem>> -> memref<8x384xf32, #tpu.memory_space<vmem>>
      %40 = tpu.memref_slice %arg12[%c0_i32_42, %35] : memref<2x2x!tpu.dma_semaphore, #tpu.memory_space<semaphore_mem>> -> memref<1x1x!tpu.dma_semaphore, #tpu.memory_space<semaphore_mem>>
      %41 = tpu.memref_squeeze %40 : memref<1x1x!tpu.dma_semaphore, #tpu.memory_space<semaphore_mem>> -> memref<!tpu.dma_semaphore, #tpu.memory_space<semaphore_mem>>
      tpu.wait_dma2 semaphore(%41 : memref<!tpu.dma_semaphore, #tpu.memory_space<semaphore_mem>>) src(%37 : memref<8x384xf32, #tpu.memory_space<any>>) dst(%39 : memref<8x384xf32, #tpu.memory_space<vmem>>)
      %c1_i32_47 = arith.constant 1 : i32
      %c0_i32_48 = arith.constant 0 : i32
      %c0_i32_49 = arith.constant 0 : i32
      %42 = tpu.memref_slice %arg3[%c0_i32_48, %c0_i32_49] : memref<64x384xf32, #tpu.memory_space<any>> -> memref<8x384xf32, #tpu.memory_space<any>>
      %c0_i32_50 = arith.constant 0 : i32
      %c0_i32_51 = arith.constant 0 : i32
      %43 = tpu.memref_slice %arg11[%35, %c0_i32_50, %c0_i32_51] : memref<2x8x384xf32, #tpu.memory_space<vmem>> -> memref<1x8x384xf32, #tpu.memory_space<vmem>>
      %44 = tpu.memref_squeeze %43 : memref<1x8x384xf32, #tpu.memory_space<vmem>> -> memref<8x384xf32, #tpu.memory_space<vmem>>
      %45 = tpu.memref_slice %arg12[%c1_i32_47, %35] : memref<2x2x!tpu.dma_semaphore, #tpu.memory_space<semaphore_mem>> -> memref<1x1x!tpu.dma_semaphore, #tpu.memory_space<semaphore_mem>>
      %46 = tpu.memref_squeeze %45 : memref<1x1x!tpu.dma_semaphore, #tpu.memory_space<semaphore_mem>> -> memref<!tpu.dma_semaphore, #tpu.memory_space<semaphore_mem>>
      tpu.wait_dma2 semaphore(%46 : memref<!tpu.dma_semaphore, #tpu.memory_space<semaphore_mem>>) src(%42 : memref<8x384xf32, #tpu.memory_space<any>>) dst(%44 : memref<8x384xf32, #tpu.memory_space<vmem>>)
      %c1_i32_52 = arith.constant 1 : i32
      %47 = arith.addi %34, %c1_i32_52 : i32
      %c8_i32_53 = arith.constant 8 : i32
      %48 = arith.cmpi slt, %47, %c8_i32_53 : i32
      %49 = arith.extui %48 : i1 to i32
      %c0_i32_54 = arith.constant 0 : i32
      %50 = arith.cmpi ne, %49, %c0_i32_54 : i32
      scf.if %50 {
        %c1_i32_97 = arith.constant 1 : i32
        %163 = arith.subi %c1_i32_97, %35 : i32
        %c1_i32_98 = arith.constant 1 : i32
        %164 = arith.addi %34, %c1_i32_98 : i32
        %c1_i32_99 = arith.constant 1 : i32
        %165 = arith.subi %36, %c1_i32_99 : i32
        %c8_i32_100 = arith.constant 8 : i32
        %166 = arith.muli %164, %c8_i32_100 : i32
        %167 = arith.addi %166, %0 : i32
        %168 = tpu.assume_multiple %167, 8 : i32
        %c8_i32_101 = arith.constant 8 : i32
        %169 = arith.muli %165, %c8_i32_101 : i32
        %170 = arith.addi %169, %0 : i32
        %171 = tpu.assume_multiple %170, 8 : i32
        %c0_i32_102 = arith.constant 0 : i32
        %c0_i32_103 = arith.constant 0 : i32
        %172 = tpu.memref_slice %arg2[%168, %c0_i32_103] : memref<64x384xf32, #tpu.memory_space<any>> -> memref<8x384xf32, #tpu.memory_space<any>>
        %c0_i32_104 = arith.constant 0 : i32
        %c0_i32_105 = arith.constant 0 : i32
        %173 = tpu.memref_slice %arg10[%163, %c0_i32_104, %c0_i32_105] : memref<2x8x384xf32, #tpu.memory_space<vmem>> -> memref<1x8x384xf32, #tpu.memory_space<vmem>>
        %174 = tpu.memref_squeeze %173 : memref<1x8x384xf32, #tpu.memory_space<vmem>> -> memref<8x384xf32, #tpu.memory_space<vmem>>
        %175 = tpu.memref_slice %arg12[%c0_i32_102, %163] : memref<2x2x!tpu.dma_semaphore, #tpu.memory_space<semaphore_mem>> -> memref<1x1x!tpu.dma_semaphore, #tpu.memory_space<semaphore_mem>>
        %176 = tpu.memref_squeeze %175 : memref<1x1x!tpu.dma_semaphore, #tpu.memory_space<semaphore_mem>> -> memref<!tpu.dma_semaphore, #tpu.memory_space<semaphore_mem>>
        tpu.enqueue_dma source(%172 : memref<8x384xf32, #tpu.memory_space<any>>) target(%174 : memref<8x384xf32, #tpu.memory_space<vmem>>) target_semaphore(%176 : memref<!tpu.dma_semaphore, #tpu.memory_space<semaphore_mem>>)
        %c1_i32_106 = arith.constant 1 : i32
        %c0_i32_107 = arith.constant 0 : i32
        %177 = tpu.memref_slice %arg3[%171, %c0_i32_107] : memref<64x384xf32, #tpu.memory_space<any>> -> memref<8x384xf32, #tpu.memory_space<any>>
        %c0_i32_108 = arith.constant 0 : i32
        %c0_i32_109 = arith.constant 0 : i32
        %178 = tpu.memref_slice %arg11[%163, %c0_i32_108, %c0_i32_109] : memref<2x8x384xf32, #tpu.memory_space<vmem>> -> memref<1x8x384xf32, #tpu.memory_space<vmem>>
        %179 = tpu.memref_squeeze %178 : memref<1x8x384xf32, #tpu.memory_space<vmem>> -> memref<8x384xf32, #tpu.memory_space<vmem>>
        %180 = tpu.memref_slice %arg12[%c1_i32_106, %163] : memref<2x2x!tpu.dma_semaphore, #tpu.memory_space<semaphore_mem>> -> memref<1x1x!tpu.dma_semaphore, #tpu.memory_space<semaphore_mem>>
        %181 = tpu.memref_squeeze %180 : memref<1x1x!tpu.dma_semaphore, #tpu.memory_space<semaphore_mem>> -> memref<!tpu.dma_semaphore, #tpu.memory_space<semaphore_mem>>
        tpu.enqueue_dma source(%177 : memref<8x384xf32, #tpu.memory_space<any>>) target(%179 : memref<8x384xf32, #tpu.memory_space<vmem>>) target_semaphore(%181 : memref<!tpu.dma_semaphore, #tpu.memory_space<semaphore_mem>>)
      } else {
      }
      %c0_55 = arith.constant 0 : index
      %c0_56 = arith.constant 0 : index
      %51 = vector.load %arg13[%c0_55, %c0_56] : memref<8x128xf32, #tpu.memory_space<vmem>>, vector<8x128xf32>
      %c0_57 = arith.constant 0 : index
      %c0_58 = arith.constant 0 : index
      %52 = vector.load %arg14[%c0_57, %c0_58] : memref<8x128xf32, #tpu.memory_space<vmem>>, vector<8x128xf32>
      %c0_59 = arith.constant 0 : index
      %c0_60 = arith.constant 0 : index
      %53 = vector.load %arg4[%c0_59, %c0_60] : memref<128x384xf32, #tpu.memory_space<vmem>>, vector<128x384xf32>
      %cst_61 = arith.constant dense<0.000000e+00> : vector<8x384xf32>
      %54 = tpu.matmul %51, %53, %cst_61 {dimension_numbers = #tpu.dot_dimension_numbers<[1], [0], [0], [1], [0, 0, 1, 1], [], []>} : vector<8x128xf32>, vector<128x384xf32>, vector<8x384xf32> -> vector<8x384xf32>
      %c0_62 = arith.constant 0 : index
      %c0_63 = arith.constant 0 : index
      %55 = vector.load %arg5[%c0_62, %c0_63] : memref<128x384xf32, #tpu.memory_space<vmem>>, vector<128x384xf32>
      %cst_64 = arith.constant dense<0.000000e+00> : vector<8x384xf32>
      %56 = tpu.matmul %52, %55, %cst_64 {dimension_numbers = #tpu.dot_dimension_numbers<[1], [0], [0], [1], [0, 0, 1, 1], [], []>} : vector<8x128xf32>, vector<128x384xf32>, vector<8x384xf32> -> vector<8x384xf32>
      %57 = arith.index_cast %35 : i32 to index
      %c0_65 = arith.constant 0 : index
      %c0_66 = arith.constant 0 : index
      %58 = vector.load %arg10[%57, %c0_65, %c0_66] : memref<2x8x384xf32, #tpu.memory_space<vmem>>, vector<1x8x384xf32>
      %59 = vector.shape_cast %58 : vector<1x8x384xf32> to vector<8x384xf32>
      %60 = arith.index_cast %35 : i32 to index
      %c0_67 = arith.constant 0 : index
      %c0_68 = arith.constant 0 : index
      %61 = vector.load %arg11[%60, %c0_67, %c0_68] : memref<2x8x384xf32, #tpu.memory_space<vmem>>, vector<1x8x384xf32>
      %62 = vector.shape_cast %61 : vector<1x8x384xf32> to vector<8x384xf32>
      %63 = vector.broadcast %34 : i32 to vector<8x1xi32>
      %64 = arith.cmpi slt, %63, %1 : vector<8x1xi32>
      %65 = vector.broadcast %36 : i32 to vector<8x1xi32>
      %66 = arith.cmpi slt, %65, %1 : vector<8x1xi32>
      %67 = vector.extract_strided_slice %59 {offsets = [0, 0], sizes = [8, 128], strides = [1, 1]} : vector<8x384xf32> to vector<8x128xf32>
      %68 = vector.extract_strided_slice %54 {offsets = [0, 0], sizes = [8, 128], strides = [1, 1]} : vector<8x384xf32> to vector<8x128xf32>
      %69 = arith.addf %67, %68 : vector<8x128xf32>
      %cst_69 = arith.constant 5.000000e-01 : f32
      %70 = vector.broadcast %cst_69 : f32 to vector<8x128xf32>
      %71 = arith.mulf %70, %69 : vector<8x128xf32>
      %72 = math.tanh %71 : vector<8x128xf32>
      %cst_70 = arith.constant 5.000000e-01 : f32
      %73 = vector.broadcast %cst_70 : f32 to vector<8x128xf32>
      %74 = arith.mulf %73, %72 : vector<8x128xf32>
      %cst_71 = arith.constant 5.000000e-01 : f32
      %75 = vector.broadcast %cst_71 : f32 to vector<8x128xf32>
      %76 = arith.addf %74, %75 : vector<8x128xf32>
      %77 = vector.extract_strided_slice %59 {offsets = [0, 128], sizes = [8, 128], strides = [1, 1]} : vector<8x384xf32> to vector<8x128xf32>
      %78 = vector.extract_strided_slice %54 {offsets = [0, 128], sizes = [8, 128], strides = [1, 1]} : vector<8x384xf32> to vector<8x128xf32>
      %79 = arith.addf %77, %78 : vector<8x128xf32>
      %cst_72 = arith.constant 5.000000e-01 : f32
      %80 = vector.broadcast %cst_72 : f32 to vector<8x128xf32>
      %81 = arith.mulf %80, %79 : vector<8x128xf32>
      %82 = math.tanh %81 : vector<8x128xf32>
      %cst_73 = arith.constant 5.000000e-01 : f32
      %83 = vector.broadcast %cst_73 : f32 to vector<8x128xf32>
      %84 = arith.mulf %83, %82 : vector<8x128xf32>
      %cst_74 = arith.constant 5.000000e-01 : f32
      %85 = vector.broadcast %cst_74 : f32 to vector<8x128xf32>
      %86 = arith.addf %84, %85 : vector<8x128xf32>
      %87 = vector.extract_strided_slice %59 {offsets = [0, 256], sizes = [8, 128], strides = [1, 1]} : vector<8x384xf32> to vector<8x128xf32>
      %88 = vector.extract_strided_slice %54 {offsets = [0, 256], sizes = [8, 128], strides = [1, 1]} : vector<8x384xf32> to vector<8x128xf32>
      %89 = vector.broadcast %2 : vector<1x128xf32> to vector<8x128xf32>
      %90 = arith.addf %88, %89 : vector<8x128xf32>
      %91 = arith.mulf %76, %90 : vector<8x128xf32>
      %92 = arith.addf %87, %91 : vector<8x128xf32>
      %93 = math.tanh %92 : vector<8x128xf32>
      %cst_75 = arith.constant 1.000000e+00 : f32
      %94 = vector.broadcast %cst_75 : f32 to vector<8x128xf32>
      %95 = arith.subf %94, %86 : vector<8x128xf32>
      %96 = arith.mulf %95, %93 : vector<8x128xf32>
      %97 = arith.mulf %86, %51 : vector<8x128xf32>
      %98 = arith.addf %96, %97 : vector<8x128xf32>
      %99 = vector.shape_cast %64 : vector<8x1xi1> to vector<8x1xi1>
      %100 = vector.broadcast %99 : vector<8x1xi1> to vector<8x128xi1>
      %101 = arith.select %100, %98, %51 : vector<8x128xi1>, vector<8x128xf32>
      %102 = vector.extract_strided_slice %62 {offsets = [0, 0], sizes = [8, 128], strides = [1, 1]} : vector<8x384xf32> to vector<8x128xf32>
      %103 = vector.extract_strided_slice %56 {offsets = [0, 0], sizes = [8, 128], strides = [1, 1]} : vector<8x384xf32> to vector<8x128xf32>
      %104 = arith.addf %102, %103 : vector<8x128xf32>
      %cst_76 = arith.constant 5.000000e-01 : f32
      %105 = vector.broadcast %cst_76 : f32 to vector<8x128xf32>
      %106 = arith.mulf %105, %104 : vector<8x128xf32>
      %107 = math.tanh %106 : vector<8x128xf32>
      %cst_77 = arith.constant 5.000000e-01 : f32
      %108 = vector.broadcast %cst_77 : f32 to vector<8x128xf32>
      %109 = arith.mulf %108, %107 : vector<8x128xf32>
      %cst_78 = arith.constant 5.000000e-01 : f32
      %110 = vector.broadcast %cst_78 : f32 to vector<8x128xf32>
      %111 = arith.addf %109, %110 : vector<8x128xf32>
      %112 = vector.extract_strided_slice %62 {offsets = [0, 128], sizes = [8, 128], strides = [1, 1]} : vector<8x384xf32> to vector<8x128xf32>
      %113 = vector.extract_strided_slice %56 {offsets = [0, 128], sizes = [8, 128], strides = [1, 1]} : vector<8x384xf32> to vector<8x128xf32>
      %114 = arith.addf %112, %113 : vector<8x128xf32>
      %cst_79 = arith.constant 5.000000e-01 : f32
      %115 = vector.broadcast %cst_79 : f32 to vector<8x128xf32>
      %116 = arith.mulf %115, %114 : vector<8x128xf32>
      %117 = math.tanh %116 : vector<8x128xf32>
      %cst_80 = arith.constant 5.000000e-01 : f32
      %118 = vector.broadcast %cst_80 : f32 to vector<8x128xf32>
      %119 = arith.mulf %118, %117 : vector<8x128xf32>
      %cst_81 = arith.constant 5.000000e-01 : f32
      %120 = vector.broadcast %cst_81 : f32 to vector<8x128xf32>
      %121 = arith.addf %119, %120 : vector<8x128xf32>
      %122 = vector.extract_strided_slice %62 {offsets = [0, 256], sizes = [8, 128], strides = [1, 1]} : vector<8x384xf32> to vector<8x128xf32>
      %123 = vector.extract_strided_slice %56 {offsets = [0, 256], sizes = [8, 128], strides = [1, 1]} : vector<8x384xf32> to vector<8x128xf32>
      %124 = vector.broadcast %3 : vector<1x128xf32> to vector<8x128xf32>
      %125 = arith.addf %123, %124 : vector<8x128xf32>
      %126 = arith.mulf %111, %125 : vector<8x128xf32>
      %127 = arith.addf %122, %126 : vector<8x128xf32>
      %128 = math.tanh %127 : vector<8x128xf32>
      %cst_82 = arith.constant 1.000000e+00 : f32
      %129 = vector.broadcast %cst_82 : f32 to vector<8x128xf32>
      %130 = arith.subf %129, %121 : vector<8x128xf32>
      %131 = arith.mulf %130, %128 : vector<8x128xf32>
      %132 = arith.mulf %121, %52 : vector<8x128xf32>
      %133 = arith.addf %131, %132 : vector<8x128xf32>
      %134 = vector.shape_cast %66 : vector<8x1xi1> to vector<8x1xi1>
      %135 = vector.broadcast %134 : vector<8x1xi1> to vector<8x128xi1>
      %136 = arith.select %135, %133, %52 : vector<8x128xi1>, vector<8x128xf32>
      %c0_83 = arith.constant 0 : index
      %c0_84 = arith.constant 0 : index
      %137 = vector.load %arg13[%c0_83, %c0_84] : memref<8x128xf32, #tpu.memory_space<vmem>>, vector<8x128xf32>
      tpu.vector_store %arg13[%c0_83, %c0_84], %101 {strides = array<i32>} : memref<8x128xf32, #tpu.memory_space<vmem>>, vector<8x128xf32>,
      %c0_85 = arith.constant 0 : index
      %c0_86 = arith.constant 0 : index
      %138 = vector.load %arg14[%c0_85, %c0_86] : memref<8x128xf32, #tpu.memory_space<vmem>>, vector<8x128xf32>
      tpu.vector_store %arg14[%c0_85, %c0_86], %136 {strides = array<i32>} : memref<8x128xf32, #tpu.memory_space<vmem>>, vector<8x128xf32>,
      %139 = arith.index_cast %34 : i32 to index
      %c0_87 = arith.constant 0 : index
      %c0_88 = arith.constant 0 : index
      %140 = vector.load %arg8[%139, %c0_87, %c0_88] : memref<8x8x128xf32, #tpu.memory_space<vmem>>, vector<1x8x128xf32>
      %141 = vector.shape_cast %140 : vector<1x8x128xf32> to vector<8x128xf32>
      %cst_89 = arith.constant 0.000000e+00 : f32
      %142 = vector.shape_cast %64 : vector<8x1xi1> to vector<8x1xi1>
      %143 = vector.broadcast %142 : vector<8x1xi1> to vector<8x128xi1>
      %144 = vector.broadcast %cst_89 : f32 to vector<8x128xf32>
      %145 = arith.select %143, %101, %144 : vector<8x128xi1>, vector<8x128xf32>
      %146 = arith.addf %141, %145 : vector<8x128xf32>
      %147 = arith.index_cast %34 : i32 to index
      %c0_90 = arith.constant 0 : index
      %c0_91 = arith.constant 0 : index
      %148 = vector.load %arg8[%147, %c0_90, %c0_91] : memref<8x8x128xf32, #tpu.memory_space<vmem>>, vector<1x8x128xf32>
      %149 = vector.shape_cast %148 : vector<1x8x128xf32> to vector<8x128xf32>
      %150 = vector.shape_cast %146 : vector<8x128xf32> to vector<1x8x128xf32>
      tpu.vector_store %arg8[%147, %c0_90, %c0_91], %150 {strides = array<i32>} : memref<8x8x128xf32, #tpu.memory_space<vmem>>, vector<1x8x128xf32>,
      %151 = arith.index_cast %36 : i32 to index
      %c0_92 = arith.constant 0 : index
      %c0_93 = arith.constant 0 : index
      %152 = vector.load %arg8[%151, %c0_92, %c0_93] : memref<8x8x128xf32, #tpu.memory_space<vmem>>, vector<1x8x128xf32>
      %153 = vector.shape_cast %152 : vector<1x8x128xf32> to vector<8x128xf32>
      %cst_94 = arith.constant 0.000000e+00 : f32
      %154 = vector.shape_cast %66 : vector<8x1xi1> to vector<8x1xi1>
      %155 = vector.broadcast %154 : vector<8x1xi1> to vector<8x128xi1>
      %156 = vector.broadcast %cst_94 : f32 to vector<8x128xf32>
      %157 = arith.select %155, %136, %156 : vector<8x128xi1>, vector<8x128xf32>
      %158 = arith.addf %153, %157 : vector<8x128xf32>
      %159 = arith.index_cast %36 : i32 to index
      %c0_95 = arith.constant 0 : index
      %c0_96 = arith.constant 0 : index
      %160 = vector.load %arg8[%159, %c0_95, %c0_96] : memref<8x8x128xf32, #tpu.memory_space<vmem>>, vector<1x8x128xf32>
      %161 = vector.shape_cast %160 : vector<1x8x128xf32> to vector<8x128xf32>
      %162 = vector.shape_cast %158 : vector<8x128xf32> to vector<1x8x128xf32>
      tpu.vector_store %arg8[%159, %c0_95, %c0_96], %162 {strides = array<i32>} : memref<8x8x128xf32, #tpu.memory_space<vmem>>, vector<1x8x128xf32>,
    }
    %c8_i32_29 = arith.constant 8 : i32
    %c0_30 = arith.constant 0 : index
    %c0_31 = arith.constant 0 : index
    %25 = vector.load %arg13[%c0_30, %c0_31] : memref<8x128xf32, #tpu.memory_space<vmem>>, vector<8x128xf32>
    %c0_32 = arith.constant 0 : index
    %c0_33 = arith.constant 0 : index
    %c0_34 = arith.constant 0 : index
    %26 = vector.load %arg9[%c0_32, %c0_33, %c0_34] : memref<2x8x128xf32, #tpu.memory_space<vmem>>, vector<1x8x128xf32>
    %27 = vector.shape_cast %26 : vector<1x8x128xf32> to vector<8x128xf32>
    %28 = vector.shape_cast %25 : vector<8x128xf32> to vector<1x8x128xf32>
    tpu.vector_store %arg9[%c0_32, %c0_33, %c0_34], %28 {strides = array<i32>} : memref<2x8x128xf32, #tpu.memory_space<vmem>>, vector<1x8x128xf32>,
    %c0_35 = arith.constant 0 : index
    %c0_36 = arith.constant 0 : index
    %29 = vector.load %arg14[%c0_35, %c0_36] : memref<8x128xf32, #tpu.memory_space<vmem>>, vector<8x128xf32>
    %c1 = arith.constant 1 : index
    %c0_37 = arith.constant 0 : index
    %c0_38 = arith.constant 0 : index
    %30 = vector.load %arg9[%c1, %c0_37, %c0_38] : memref<2x8x128xf32, #tpu.memory_space<vmem>>, vector<1x8x128xf32>
    %31 = vector.shape_cast %30 : vector<1x8x128xf32> to vector<8x128xf32>
    %32 = vector.shape_cast %29 : vector<8x128xf32> to vector<1x8x128xf32>
    tpu.vector_store %arg9[%c1, %c0_37, %c0_38], %32 {strides = array<i32>} : memref<2x8x128xf32, #tpu.memory_space<vmem>>, vector<1x8x128xf32>,
    return
  }
  func.func @transform_0(%arg0: i32) -> (i32, i32) {
    %c0_i32 = arith.constant 0 : i32
    %c0_i32_0 = arith.constant 0 : i32
    return %arg0, %c0_i32 : i32, i32
  }
  func.func @transform_3(%arg0: i32) -> (i32, i32) {
    %c0_i32 = arith.constant 0 : i32
    %c0_i32_0 = arith.constant 0 : i32
    %c0_i32_1 = arith.constant 0 : i32
    return %c0_i32, %c0_i32_0 : i32, i32
  }
  func.func @transform_4(%arg0: i32) -> (i32, i32) {
    %c0_i32 = arith.constant 0 : i32
    %c0_i32_0 = arith.constant 0 : i32
    %c0_i32_1 = arith.constant 0 : i32
    return %c0_i32, %c0_i32_0 : i32, i32
  }
  func.func @transform_5(%arg0: i32) -> (i32, i32) {
    %c0_i32 = arith.constant 0 : i32
    %c0_i32_0 = arith.constant 0 : i32
    %c0_i32_1 = arith.constant 0 : i32
    return %c0_i32, %c0_i32_0 : i32, i32
  }
  func.func @transform_6(%arg0: i32) -> (i32, i32) {
    %c0_i32 = arith.constant 0 : i32
    %c0_i32_0 = arith.constant 0 : i32
    %c0_i32_1 = arith.constant 0 : i32
    return %c0_i32, %c0_i32_0 : i32, i32
  }
  func.func @transform_7(%arg0: i32) -> (i32, i32, i32) {
    %c0_i32 = arith.constant 0 : i32
    %c0_i32_0 = arith.constant 0 : i32
    %c0_i32_1 = arith.constant 0 : i32
    return %c0_i32, %arg0, %c0_i32_0 : i32, i32, i32
  }
  func.func @transform_8(%arg0: i32) -> (i32, i32, i32) {
    %c0_i32 = arith.constant 0 : i32
    %c0_i32_0 = arith.constant 0 : i32
    %c0_i32_1 = arith.constant 0 : i32
    return %c0_i32, %arg0, %c0_i32_0 : i32, i32, i32
  }
}

</mosaic_0001>

<bundles_post_ra>
// kernel: encoder_rnn_forward.2
= control target key start
LH: loop header
LB: loop body
LE: loop exit
PB: predicated region body
PF: predicated region fallthrough
CT: control target
= control target key end

     0   :  { %v917_v3 = vmov 0.0   ;;  %s1536_s1 = inlined_call_operand.vmem [shape: f32[128,384], index: 1, kind: input, shape index: {}]   ;;  %s1537_s0 = inlined_call_operand.vmem [shape: f32[64,128], index: 0, kind: input, shape index: {}]   ;;  %s1538_s2 = inlined_call_operand.vmem [shape: f32[128,384], index: 2, kind: input, shape index: {}]   ;;  %s1539_s3 = inlined_call_operand.vmem [shape: f32[1,384], index: 3, kind: input, shape index: {}]   ;;  %s1540_s5 = inlined_call_operand.vmem [shape: f32[64,384], index: 5, kind: output, shape index: {0}]   ;;  %s1541_s4 = inlined_call_operand.vmem [shape: f32[1,384], index: 4, kind: input, shape index: {}]   ;;  %s1542_s6 = inlined_call_operand.vmem [shape: f32[64,384], index: 6, kind: output, shape index: {1}]  }
   0x1   :  { %v31_v0 = vld [vmem:[%s1536_s1 + $0x8] sm:$0xff]  ;;  %v34_v1 = vld [vmem:[%s1536_s1 + $0x20] sm:$0xff]  ;;  %159 = vmatprep.mubr.f32.mxu0 %v917_v3  ;;  %v33_v5 = vld [vmem:[%s1536_s1 + $0x18] sm:$0xff] }
   0x2   :  { %v30_v2 = vld [vmem:[%s1536_s1] sm:$0xff]  ;;  %v788_v4 = vpack.c.bf16 %v34_v1, %v31_v0  ;;  %v37_v6 = vld [vmem:[%s1536_s1 + $0x38] sm:$0xff]  ;;  %v40_v7 = vld [vmem:[%s1536_s1 + $0x50] sm:$0xff] }
   0x3   :  { %v790_v8 = vpack.c.bf16 %v33_v5, %v30_v2  ;;  %v792_v9 = vpack.c.bf16 %v40_v7, %v37_v6  ;;  %v36_v10 = vld [vmem:[%s1536_s1 + $0x30] sm:$0xff]  ;;  %v39_v11 = vld [vmem:[%s1536_s1 + $0x48] sm:$0xff]  ;;  %v46_v13 = vld [vmem:[%s1536_s1 + $0x80] sm:$0xff] }
   0x4   :  { %v43_v12 = vld [vmem:[%s1536_s1 + $0x68] sm:$0xff]  ;;  %789 = vmatprep.subr.bf16.mxu0 %v788_v4  ;;  %v794_v14 = vpack.c.bf16 %v39_v11, %v36_v10  ;;  %v42_v16 = vld [vmem:[%s1536_s1 + $0x60] sm:$0xff]  ;;  %v45_v17 = vld [vmem:[%s1536_s1 + $0x78] sm:$0xff] }
   0x5   :  { %791 = vmatpush1.bf16.msra.mxu0 %v790_v8  ;;  %v796_v15 = vpack.c.bf16 %v46_v13, %v43_v12  ;;  %v49_v18 = vld [vmem:[%s1536_s1 + $0x98] sm:$0xff]  ;;  %v52_v19 = vld [vmem:[%s1536_s1 + $0xb0] sm:$0xff]  ;;  %v35_v21 = vld [vmem:[%s1536_s1 + $0x28] sm:$0xff]  ;;  %v798_v23 = vpack.c.bf16 %v45_v17, %v42_v16 }
   0x6   :  { %793 = vmatprep.subr.bf16.mxu0 %v792_v9  ;;  %v32_v20 = vld [vmem:[%s1536_s1 + $0x10] sm:$0xff]  ;;  %v38_v24 = vld [vmem:[%s1536_s1 + $0x40] sm:$0xff]  ;;  %v41_v25 = vld [vmem:[%s1536_s1 + $0x58] sm:$0xff]  ;;  %v800_v26 = vpack.c.bf16 %v52_v19, %v49_v18 }
   0x7   :  { %v820_v22 = vpack.c.bf16 %v35_v21, %v32_v20  ;;  %v48_v27 = vld [vmem:[%s1536_s1 + $0x90] sm:$0xff]  ;;  %v51_v28 = vld [vmem:[%s1536_s1 + $0xa8] sm:$0xff]  ;;  %v824_v30 = vpack.c.bf16 %v41_v25, %v38_v24  ;;  %v58_v31 = vld [vmem:[%s1536_s1 + $0xe0] sm:$0xff] }
   0x8   :  { %v55_v29 = vld [vmem:[%s1536_s1 + $0xc8] sm:$0xff]  ;;  %v44_v32 = vld [vmem:[%s1536_s1 + $0x70] sm:$0xff]  ;;  %v802_v35 = vpack.c.bf16 %v51_v28, %v48_v27  ;;  %v50_v36 = vld [vmem:[%s1536_s1 + $0xa0] sm:$0xff] }
   0x9   :  { %795 = vmatpush1.bf16.msra.mxu0 %v794_v14  ;;  %821 = vmatprep.subr.bf16.mxu1 %v820_v22  ;;  %v47_v33 = vld [vmem:[%s1536_s1 + $0x88] sm:$0xff]  ;;  %v53_v37 = vld [vmem:[%s1536_s1 + $0xb8] sm:$0xff]  ;;  %v804_v38 = vpack.c.bf16 %v58_v31, %v55_v29  ;;  %v54_v39 = vld [vmem:[%s1536_s1 + $0xc0] sm:$0xff] }
   0xa   :  { %797 = vmatprep.subr.bf16.mxu0 %v796_v15  ;;  %823 = vmatpush3.bf16.msra.mxu1 %v820_v22  ;;  %v828_v34 = vpack.c.bf16 %v47_v33, %v44_v32  ;;  %v57_v40 = vld [vmem:[%s1536_s1 + $0xd8] sm:$0xff]  ;;  %v1041_v41 = vld [vmem:[%s1537_s0] sm:$0xff]  ;;  %v64_v43 = vld [vmem:[%s1536_s1 + $0x110] sm:$0xff]  ;;  %v832_v44 = vpack.c.bf16 %v53_v37, %v50_v36 }
   0xb   :  { %825 = vmatprep.subr.bf16.mxu1 %v824_v30  ;;  %v61_v42 = vld [vmem:[%s1536_s1 + $0xf8] sm:$0xff]  ;;  %732 = vmatprep.mubr.f32.mxu1 %v1041_v41  ;;  %v806_v45 = vpack.c.bf16 %v57_v40, %v54_v39  ;;  %v56_v46 = vld [vmem:[%s1536_s1 + $0xd0] sm:$0xff]  ;;  %v59_v47 = vld [vmem:[%s1536_s1 + $0xe8] sm:$0xff] }
   0xc   :  { %v808_v48 = vpack.c.bf16 %v64_v43, %v61_v42  ;;  %v60_v49 = vld [vmem:[%s1536_s1 + $0xf0] sm:$0xff]  ;;  %v63_v50 = vld [vmem:[%s1536_s1 + $0x108] sm:$0xff]  ;;  %v70_v52 = vld [vmem:[%s1536_s1 + $0x140] sm:$0xff]  ;;  %v836_v53 = vpack.c.bf16 %v59_v47, %v56_v46 }
   0xd   :  { %799 = vmatpush1.bf16.msra.mxu0 %v798_v23  ;;  %v67_v51 = vld [vmem:[%s1536_s1 + $0x128] sm:$0xff]  ;;  %v810_v54 = vpack.c.bf16 %v63_v50, %v60_v49  ;;  %v62_v55 = vld [vmem:[%s1536_s1 + $0x100] sm:$0xff]  ;;  %v65_v56 = vld [vmem:[%s1536_s1 + $0x118] sm:$0xff] }
   0xe   :  { %801 = vmatprep.subr.bf16.mxu0 %v800_v26  ;;  %827 = vmatpush3.bf16.msra.mxu1 %v824_v30  ;;  %v812_v57 = vpack.c.bf16 %v70_v52, %v67_v51  ;;  %v66_v58 = vld [vmem:[%s1536_s1 + $0x120] sm:$0xff]  ;;  %v69_v59 = vld [vmem:[%s1536_s1 + $0x138] sm:$0xff]  ;;  %v76_v61 = vld [vmem:[%s1536_s1 + $0x170] sm:$0xff]  ;;  %v840_v62 = vpack.c.bf16 %v65_v56, %v62_v55 }
   0xf   :  { %829 = vmatprep.subr.bf16.mxu1 %v828_v34  ;;  %v73_v60 = vld [vmem:[%s1536_s1 + $0x158] sm:$0xff]  ;;  %v814_v63 = vpack.c.bf16 %v69_v59, %v66_v58  ;;  %v68_v0 = vld [vmem:[%s1536_s1 + $0x130] sm:$0xff]  ;;  %v71_v1 = vld [vmem:[%s1536_s1 + $0x148] sm:$0xff] }
  0x10   :  { %v816_v2 = vpack.c.bf16 %v76_v61, %v73_v60  ;;  %v72_v4 = vld [vmem:[%s1536_s1 + $0x150] sm:$0xff]  ;;  %v75_v5 = vld [vmem:[%s1536_s1 + $0x168] sm:$0xff]  ;;  %v317_v7 = vld [vmem:[%s1538_s2 + $0x20] sm:$0xff]  ;;  %v844_v8 = vpack.c.bf16 %v71_v1, %v68_v0 }
  0x11   :  { %803 = vmatpush1.bf16.msra.mxu0 %v802_v35  ;;  %v314_v6 = vld [vmem:[%s1538_s2 + $0x8] sm:$0xff]  ;;  %v818_v9 = vpack.c.bf16 %v75_v5, %v72_v4  ;;  %v74_v10 = vld [vmem:[%s1536_s1 + $0x160] sm:$0xff]  ;;  %v77_v11 = vld [vmem:[%s1536_s1 + $0x178] sm:$0xff] }
  0x12   :  { %805 = vmatprep.subr.bf16.mxu0 %v804_v38  ;;  %831 = vmatpush3.bf16.msra.mxu1 %v828_v34  ;;  %v852_v12 = vpack.c.bf16 %v317_v7, %v314_v6  ;;  %v313_v13 = vld [vmem:[%s1538_s2] sm:$0xff]  ;;  %v316_v14 = vld [vmem:[%s1538_s2 + $0x18] sm:$0xff]  ;;  %v323_v16 = vld [vmem:[%s1538_s2 + $0x50] sm:$0xff]  ;;  %v848_v17 = vpack.c.bf16 %v77_v11, %v74_v10 }
  0x13   :  { %833 = vmatprep.subr.bf16.mxu1 %v832_v44  ;;  %v320_v15 = vld [vmem:[%s1538_s2 + $0x38] sm:$0xff]  ;;  %v854_v18 = vpack.c.bf16 %v316_v14, %v313_v13  ;;  %v315_v19 = vld [vmem:[%s1538_s2 + $0x10] sm:$0xff]  ;;  %v318_v20 = vld [vmem:[%s1538_s2 + $0x28] sm:$0xff] }
  0x14   :  { %v856_v21 = vpack.c.bf16 %v323_v16, %v320_v15  ;;  %v319_v22 = vld [vmem:[%s1538_s2 + $0x30] sm:$0xff]  ;;  %v322_v23 = vld [vmem:[%s1538_s2 + $0x48] sm:$0xff]  ;;  %v329_v25 = vld [vmem:[%s1538_s2 + $0x80] sm:$0xff]  ;;  %v884_v26 = vpack.c.bf16 %v318_v20, %v315_v19 }
  0x15   :  { %807 = vmatpush1.bf16.msra.mxu0 %v806_v45  ;;  %v326_v24 = vld [vmem:[%s1538_s2 + $0x68] sm:$0xff]  ;;  %v858_v28 = vpack.c.bf16 %v322_v23, %v319_v22  ;;  %v321_v29 = vld [vmem:[%s1538_s2 + $0x40] sm:$0xff]  ;;  %v324_v30 = vld [vmem:[%s1538_s2 + $0x58] sm:$0xff] }
  0x16   :  { %809 = vmatprep.subr.bf16.mxu0 %v808_v48  ;;  %835 = vmatpush3.bf16.msra.mxu1 %v832_v44  ;;  %v1145_v27 = vld [vmem:[%s1537_s0 + $0x8] sm:$0xff]  ;;  %v860_v31 = vpack.c.bf16 %v329_v25, %v326_v24  ;;  %v325_v32 = vld [vmem:[%s1538_s2 + $0x60] sm:$0xff]  ;;  %v328_v33 = vld [vmem:[%s1538_s2 + $0x78] sm:$0xff]  ;;  %v888_v36 = vpack.c.bf16 %v324_v30, %v321_v29 }
  0x17   :  { %837 = vmatprep.subr.bf16.mxu1 %v836_v53  ;;  %v332_v34 = vld [vmem:[%s1538_s2 + $0x98] sm:$0xff]  ;;  %v335_v35 = vld [vmem:[%s1538_s2 + $0xb0] sm:$0xff]  ;;  %v862_v38 = vpack.c.bf16 %v328_v33, %v325_v32  ;;  %v330_v40 = vld [vmem:[%s1538_s2 + $0x88] sm:$0xff] }
  0x18   :  { %v1170_v37 = vld [vmem:[%s1537_s0 + $0x10] sm:$0xff]  ;;  %v864_v42 = vpack.c.bf16 %v335_v35, %v332_v34  ;;  %v334_v44 = vld [vmem:[%s1538_s2 + $0xa8] sm:$0xff]  ;;  %v341_v46 = vld [vmem:[%s1538_s2 + $0xe0] sm:$0xff] }
  0x19   :  { %811 = vmatpush1.bf16.msra.mxu0 %v810_v54  ;;  %v327_v39 = vld [vmem:[%s1538_s2 + $0x70] sm:$0xff]  ;;  %v338_v45 = vld [vmem:[%s1538_s2 + $0xc8] sm:$0xff]  ;;  %v1197_v48 = vld [vmem:[%s1537_s0 + $0x18] sm:$0xff] }
  0x1a   :  { %813 = vmatprep.subr.bf16.mxu0 %v812_v57  ;;  %839 = vmatpush3.bf16.msra.mxu1 %v836_v53  ;;  %v331_v43 = vld [vmem:[%s1538_s2 + $0x90] sm:$0xff]  ;;  %v892_v47 = vpack.c.bf16 %v330_v40, %v327_v39  ;;  %v333_v50 = vld [vmem:[%s1538_s2 + $0xa0] sm:$0xff]  ;;  %v336_v51 = vld [vmem:[%s1538_s2 + $0xb8] sm:$0xff]  ;;  %v868_v53 = vpack.c.bf16 %v341_v46, %v338_v45 }
  0x1b   :  { %841 = vmatprep.subr.bf16.mxu1 %v840_v62  ;;  %v866_v49 = vpack.c.bf16 %v334_v44, %v331_v43  ;;  %v1208_v52 = vld [vmem:[%s1537_s0 + $0x20] sm:$0xff]  ;;  %v340_v55 = vld [vmem:[%s1538_s2 + $0xd8] sm:$0xff]  ;;  %v347_v57 = vld [vmem:[%s1538_s2 + $0x110] sm:$0xff]  ;;  %v896_v58 = vpack.c.bf16 %v336_v51, %v333_v50 }
  0x1c   :  { %v337_v54 = vld [vmem:[%s1538_s2 + $0xc0] sm:$0xff]  ;;  %v344_v56 = vld [vmem:[%s1538_s2 + $0xf8] sm:$0xff]  ;;  %v1229_v60 = vld [vmem:[%s1537_s0 + $0x28] sm:$0xff] }
  0x1d   :  { %815 = vmatpush1.bf16.msra.mxu0 %v814_v63  ;;  %v870_v59 = vpack.c.bf16 %v340_v55, %v337_v54  ;;  %v339_v61 = vld [vmem:[%s1538_s2 + $0xd0] sm:$0xff]  ;;  %v872_v63 = vpack.c.bf16 %v347_v57, %v344_v56  ;;  %v346_v1 = vld [vmem:[%s1538_s2 + $0x108] sm:$0xff]  ;;  %v353_v5 = vld [vmem:[%s1538_s2 + $0x140] sm:$0xff] }
  0x1e   :  { %817 = vmatprep.subr.bf16.mxu0 %v816_v2  ;;  %843 = vmatpush3.bf16.msra.mxu1 %v840_v62  ;;  %v342_v62 = vld [vmem:[%s1538_s2 + $0xe8] sm:$0xff]  ;;  %v343_v0 = vld [vmem:[%s1538_s2 + $0xf0] sm:$0xff]  ;;  %v348_v10 = vld [vmem:[%s1538_s2 + $0x118] sm:$0xff] }
  0x1f   :  { %845 = vmatprep.subr.bf16.mxu1 %v844_v8  ;;  %v1246_v2 = vld [vmem:[%s1537_s0 + $0x30] sm:$0xff]  ;;  %v350_v4 = vld [vmem:[%s1538_s2 + $0x128] sm:$0xff]  ;;  %v900_v6 = vpack.c.bf16 %v342_v62, %v339_v61  ;;  %v874_v7 = vpack.c.bf16 %v346_v1, %v343_v0  ;;  %v352_v13 = vld [vmem:[%s1538_s2 + $0x138] sm:$0xff] }
  0x20   :  { %v876_v11 = vpack.c.bf16 %v353_v5, %v350_v4  ;;  %v356_v14 = vld [vmem:[%s1538_s2 + $0x158] sm:$0xff]  ;;  %v359_v15 = vld [vmem:[%s1538_s2 + $0x170] sm:$0xff]  ;;  %v354_v19 = vld [vmem:[%s1538_s2 + $0x148] sm:$0xff] }
  0x21   :  { %819 = vmatpush1.bf16.msra.mxu0 %v818_v9  ;;  %v345_v9 = vld [vmem:[%s1538_s2 + $0x100] sm:$0xff]  ;;  %v880_v20 = vpack.c.bf16 %v359_v15, %v356_v14  ;;  %v358_v22 = vld [vmem:[%s1538_s2 + $0x168] sm:$0xff] }
  0x22   :  { %853 = vmatprep.subr.bf16.mxu0 %v852_v12  ;;  %847 = vmatpush3.bf16.msra.mxu1 %v844_v8  ;;  %v1261_v8 = vld [vmem:[%s1537_s0 + $0x38] sm:$0xff]  ;;  %v349_v12 = vld [vmem:[%s1538_s2 + $0x120] sm:$0xff]  ;;  %v904_v16 = vpack.c.bf16 %v348_v10, %v345_v9 }
  0x23   :  { %849 = vmatprep.subr.bf16.mxu1 %v848_v17  ;;  %v357_v25 = vld [vmem:[%s1538_s2 + $0x160] sm:$0xff] }
  0x24   :  { %160 = vmatmul.mubr.f32.vlgmr.msra.gmra.mrb[0].mxu0 %v1041_v41  ;;  %v78_v30 = vld [vmem:[%s1539_s3] sm:$0x7] }
  0x25   :  { %855 = vmatpush1.bf16.msra.mxu0 %v854_v18  ;;  %165 = vmatprep.mubr.f32.mxu0 %v917_v3  ;;  %v351_v18 = vld [vmem:[%s1538_s2 + $0x130] sm:$0xff] }
  0x26   :  { %857 = vmatprep.subr.bf16.mxu0 %v856_v21  ;;  %851 = vmatpush3.bf16.msra.mxu1 %v848_v17  ;;  %v878_v17 = vpack.c.bf16 %v352_v13, %v349_v12  ;;  %v355_v21 = vld [vmem:[%s1538_s2 + $0x150] sm:$0xff]  ;;  %v908_v23 = vpack.c.bf16 %v354_v19, %v351_v18 }
  0x27   :  { %885 = vmatprep.subr.bf16.mxu1 %v884_v26  ;;  %v882_v24 = vpack.c.bf16 %v358_v22, %v355_v21 }
  0x28   :  { %166 = vmatmul.mubr.f32.gmra.mrb[2].mxu0 %v1145_v27 }
  0x29   :  { %859 = vmatpush1.bf16.msra.mxu0 %v858_v28  ;;  %171 = vmatprep.mubr.f32.mxu0 %v917_v3 }
  0x2a   :  { %861 = vmatprep.subr.bf16.mxu0 %v860_v31  ;;  %733 = vmatmul.mubr.f32.vlgmr.msra.gmra.mrb[0].mxu1 %v1145_v27 }
  0x2b   :  { %887 = vmatpush3.bf16.msra.mxu1 %v884_v26  ;;  %735 = vmatprep.mubr.f32.mxu1 %v1170_v37  ;;  %v360_v26 = vld [vmem:[%s1538_s2 + $0x178] sm:$0xff] }
  0x2c   :  { %172 = vmatmul.mubr.f32.gmra.mrb[4].mxu0 %v1170_v37  ;;  %889 = vmatprep.subr.bf16.mxu1 %v888_v36  ;;  %v912_v28 = vpack.c.bf16 %v360_v26, %v357_v25 }
  0x2d   :  { %863 = vmatpush1.bf16.msra.mxu0 %v862_v38  ;;  %177 = vmatprep.mubr.f32.mxu0 %v917_v3 }
  0x2e   :  { %865 = vmatprep.subr.bf16.mxu0 %v864_v42  ;;  %736 = vmatmul.mubr.f32.gmra.mrb[2].mxu1 %v1197_v48 }
  0x2f   :  { %891 = vmatpush3.bf16.msra.mxu1 %v888_v36  ;;  %738 = vmatprep.mubr.f32.mxu1 %v1208_v52 }
  0x30   :  { %178 = vmatmul.mubr.f32.gmra.mrb[6].mxu0 %v1197_v48  ;;  %893 = vmatprep.subr.bf16.mxu1 %v892_v47 }
  0x31   :  { %867 = vmatpush1.bf16.msra.mxu0 %v866_v49  ;;  %183 = vmatprep.mubr.f32.mxu0 %v917_v3 }
  0x32   :  { %869 = vmatprep.subr.bf16.mxu0 %v868_v53  ;;  %739 = vmatmul.mubr.f32.gmra.mrb[4].mxu1 %v1229_v60 }
  0x33   :  { %895 = vmatpush3.bf16.msra.mxu1 %v892_v47  ;;  %741 = vmatprep.mubr.f32.mxu1 %v1246_v2 }
  0x34   :  { %184 = vmatmul.mubr.f32.gmra.mrb[8].mxu0 %v1208_v52  ;;  %897 = vmatprep.subr.bf16.mxu1 %v896_v58 }
  0x35   :  { %871 = vmatpush1.bf16.msra.mxu0 %v870_v59  ;;  %189 = vmatprep.mubr.f32.mxu0 %v917_v3 }
  0x36   :  { %873 = vmatprep.subr.bf16.mxu0 %v872_v63  ;;  %742 = vmatmul.mubr.f32.gmra.mrb[6].mxu1 %v1261_v8 }
  0x37   :  { %899 = vmatpush3.bf16.msra.mxu1 %v896_v58  ;;  %776 = vmatprep.mubr.f32.mxu1 %v1041_v41 }
  0x38   :  { %190 = vmatmul.mubr.f32.gmra.mrb[10].mxu0 %v1229_v60  ;;  %901 = vmatprep.subr.bf16.mxu1 %v900_v6 }
  0x39   :  { %875 = vmatpush1.bf16.msra.mxu0 %v874_v7  ;;  %195 = vmatprep.mubr.f32.mxu0 %v917_v3 }
  0x3a   :  { %877 = vmatprep.subr.bf16.mxu0 %v876_v11 }
  0x3b   :  { %903 = vmatpush3.bf16.msra.mxu1 %v900_v6 }
  0x3c   :  { %196 = vmatmul.mubr.f32.gmra.mrb[12].mxu0 %v1246_v2  ;;  %905 = vmatprep.subr.bf16.mxu1 %v904_v16 }
  0x3d   :  { %879 = vmatpush1.bf16.msra.mxu0 %v878_v17  ;;  %201 = vmatprep.mubr.f32.mxu0 %v917_v3  ;;  %v361_v17 = vld [vmem:[%s1541_s4] sm:$0x7] }
  0x3e   :  { %881 = vmatprep.subr.bf16.mxu0 %v880_v20 }
  0x3f   :  { %907 = vmatpush3.bf16.msra.mxu1 %v904_v16 }
  0x40   :  { %202 = vmatmul.mubr.f32.gmra.mrb[14].mxu0 %v1261_v8  ;;  %909 = vmatprep.subr.bf16.mxu1 %v908_v23 }
  0x41   :  { %883 = vmatpush1.bf16.msra.mxu0 %v882_v24  ;;  %442 = vmatprep.mubr.f32.mxu0 %v917_v3 }
  0x43   :  { %911 = vmatpush3.bf16.msra.mxu1 %v908_v23 }
  0x44   :  { %443 = vmatmul.mubr.f32.vlgmr.msra.gmra.mrb[16].mxu0 %v1041_v41  ;;  %913 = vmatprep.subr.bf16.mxu1 %v912_v28  ;;  %v80_v41 = vlaneseq }
  0x45   :  { %448 = vmatprep.mubr.f32.mxu0 %v917_v3 }
  0x47   :  { %915 = vmatpush3.bf16.msra.mxu1 %v912_v28 }
  0x48   :  { %449 = vmatmul.mubr.f32.gmra.mrb[18].mxu0 %v1145_v27 }
  0x49   :  { %454 = vmatprep.mubr.f32.mxu0 %v917_v3 }
  0x4a   :  { %777 = vmatmul.mubr.f32.vlgmr.msra.gmra.mrb[8].mxu1 %v1145_v27  ;;  %v1329_v27 = vshrl.u32 %v80_v41, 7 }
  0x4b   :  { %779 = vmatprep.mubr.f32.mxu1 %v1170_v37 }
  0x4c   :  { %455 = vmatmul.mubr.f32.gmra.mrb[20].mxu0 %v1170_v37  ;;  %v82_v29 = vsub.s32 0, %v1329_v27  ;;  %v86_v31 = vsub.s32 1, %v1329_v27  ;;  %v90_v33 = vsub.s32 2, %v1329_v27 }
  0x4d   :  { %460 = vmatprep.mubr.f32.mxu0 %v917_v3 }
  0x4e   :  { %780 = vmatmul.mubr.f32.gmra.mrb[10].mxu1 %v1197_v48  ;;  %v1338_v32 = vrot.slane %v78_v30, %v82_v29  ;;  %v91_v38 = vrot.slane %v78_v30, %v90_v33  ;;  %v1433_v21 = vrot.slane %v361_v17, %v82_v29  ;;  %v1438_v23 = vrot.slane %v361_v17, %v86_v31 }
  0x4f   :  { %782 = vmatprep.mubr.f32.mxu1 %v1208_v52  ;;  %v374_v41 = vrot.slane %v361_v17, %v90_v33 }
  0x50   :  { %461 = vmatmul.mubr.f32.gmra.mrb[22].mxu0 %v1197_v48 }
  0x51   :  { %466 = vmatprep.mubr.f32.mxu0 %v917_v3 }
  0x52   :  { %783 = vmatmul.mubr.f32.gmra.mrb[12].mxu1 %v1229_v60 }
  0x53   :  { %785 = vmatprep.mubr.f32.mxu1 %v1246_v2 }
  0x54   :  { %467 = vmatmul.mubr.f32.gmra.mrb[24].mxu0 %v1208_v52 }
  0x55   :  { %472 = vmatprep.mubr.f32.mxu0 %v917_v3 }
  0x56   :  { %786 = vmatmul.mubr.f32.gmra.mrb[14].mxu1 %v1261_v8 }
  0x58   :  { %473 = vmatmul.mubr.f32.gmra.mrb[26].mxu0 %v1229_v60 }
  0x59   :  { %478 = vmatprep.mubr.f32.mxu0 %v917_v3 }
  0x5c   :  { %479 = vmatmul.mubr.f32.gmra.mrb[28].mxu0 %v1246_v2 }
  0x5d   :  { %484 = vmatprep.mubr.f32.mxu0 %v917_v3  ;;  %v1342_v3 = vrot.slane %v78_v30, %v86_v31 }
  0x60   :  { %485 = vmatmul.mubr.f32.gmra.mrb[30].mxu0 %v1261_v8 }
  0xf7   :  { %v161_v34 = vpop.f32.mrb[0].mxu0 }
  0xf8   :  { %v162_v35 = vadd.f32 %v161_v34, %v1338_v32  ;;  %v163_v36 = vpop.f32.mrb[1].mxu0 }
  0xf9   :  { %v164_v37 = vadd.f32 %v163_v36, %v1342_v3 }
  0xfa   :  { %596 = vst [vmem:[%s1540_s5] sm:$0xff] %v162_v35 }
  0xfb   :  { %597 = vst [vmem:[%s1540_s5 + $0x8] sm:$0xff] %v164_v37  ;;  %v167_v39 = vpop.f32.mrb[2].mxu0 }
  0xfc   :  { %v168_v40 = vadd.f32 %v167_v39, %v1338_v32  ;;  %v169_v42 = vpop.f32.mrb[3].mxu0 }
  0xfd   :  { %v170_v43 = vadd.f32 %v169_v42, %v1342_v3  ;;  %v734_v44 = vpop.f32.mrb[0].mxu1 }
  0xfe   :  { %599 = vst [vmem:[%s1540_s5 + $0x18] sm:$0xff] %v168_v40  ;;  %v280_v45 = vadd.f32 %v734_v44, %v91_v38  ;;  %v274_v46 = vpop.f32.mrb[1].mxu1 }
  0xff   :  { %600 = vst [vmem:[%s1540_s5 + $0x20] sm:$0xff] %v170_v43  ;;  %v173_v47 = vpop.f32.mrb[4].mxu0  ;;  %v275_v48 = vadd.f32 %v274_v46, %v91_v38 }
 0x100   :  { %v174_v49 = vadd.f32 %v173_v47, %v1338_v32  ;;  %v175_v50 = vpop.f32.mrb[5].mxu0  ;;  %601 = vst [vmem:[%s1540_s5 + $0x28] sm:$0xff] %v280_v45 }
 0x101   :  { %v176_v51 = vadd.f32 %v175_v50, %v1342_v3  ;;  %598 = vst [vmem:[%s1540_s5 + $0x10] sm:$0xff] %v275_v48  ;;  %v737_v52 = vpop.f32.mrb[2].mxu1 }
 0x102   :  { %602 = vst [vmem:[%s1540_s5 + $0x30] sm:$0xff] %v174_v49  ;;  %v290_v53 = vadd.f32 %v737_v52, %v91_v38  ;;  %v284_v54 = vpop.f32.mrb[3].mxu1 }
 0x103   :  { %603 = vst [vmem:[%s1540_s5 + $0x38] sm:$0xff] %v176_v51  ;;  %v179_v55 = vpop.f32.mrb[6].mxu0  ;;  %v285_v56 = vadd.f32 %v284_v54, %v91_v38 }
 0x104   :  { %v180_v57 = vadd.f32 %v179_v55, %v1338_v32  ;;  %v181_v58 = vpop.f32.mrb[7].mxu0  ;;  %607 = vst [vmem:[%s1540_s5 + $0x58] sm:$0xff] %v290_v53 }
 0x105   :  { %v182_v59 = vadd.f32 %v181_v58, %v1342_v3  ;;  %604 = vst [vmem:[%s1540_s5 + $0x40] sm:$0xff] %v285_v56  ;;  %v740_v60 = vpop.f32.mrb[4].mxu1 }
 0x106   :  { %605 = vst [vmem:[%s1540_s5 + $0x48] sm:$0xff] %v180_v57  ;;  %v300_v61 = vadd.f32 %v740_v60, %v91_v38  ;;  %v294_v62 = vpop.f32.mrb[5].mxu1 }
 0x107   :  { %606 = vst [vmem:[%s1540_s5 + $0x50] sm:$0xff] %v182_v59  ;;  %v185_v63 = vpop.f32.mrb[8].mxu0  ;;  %v295_v0 = vadd.f32 %v294_v62, %v91_v38 }
 0x108   :  { %v186_v1 = vadd.f32 %v185_v63, %v1338_v32  ;;  %v187_v2 = vpop.f32.mrb[9].mxu0  ;;  %613 = vst [vmem:[%s1540_s5 + $0x88] sm:$0xff] %v300_v61 }
 0x109   :  { %v188_v4 = vadd.f32 %v187_v2, %v1342_v3  ;;  %610 = vst [vmem:[%s1540_s5 + $0x70] sm:$0xff] %v295_v0  ;;  %v743_v5 = vpop.f32.mrb[6].mxu1 }
 0x10a   :  { %608 = vst [vmem:[%s1540_s5 + $0x60] sm:$0xff] %v186_v1  ;;  %v310_v6 = vadd.f32 %v743_v5, %v91_v38  ;;  %v304_v7 = vpop.f32.mrb[7].mxu1 }
 0x10b   :  { %609 = vst [vmem:[%s1540_s5 + $0x68] sm:$0xff] %v188_v4  ;;  %v191_v8 = vpop.f32.mrb[10].mxu0  ;;  %v305_v9 = vadd.f32 %v304_v7, %v91_v38 }
 0x10c   :  { %v192_v10 = vadd.f32 %v191_v8, %v1338_v32  ;;  %v193_v11 = vpop.f32.mrb[11].mxu0  ;;  %619 = vst [vmem:[%s1540_s5 + $0xb8] sm:$0xff] %v310_v6 }
 0x10d   :  { %v194_v12 = vadd.f32 %v193_v11, %v1342_v3  ;;  %616 = vst [vmem:[%s1540_s5 + $0xa0] sm:$0xff] %v305_v9 }
 0x10e   :  { %611 = vst [vmem:[%s1540_s5 + $0x78] sm:$0xff] %v192_v10 }
 0x10f   :  { %612 = vst [vmem:[%s1540_s5 + $0x80] sm:$0xff] %v194_v12  ;;  %v197_v13 = vpop.f32.mrb[12].mxu0 }
 0x110   :  { %v198_v14 = vadd.f32 %v197_v13, %v1338_v32  ;;  %v199_v15 = vpop.f32.mrb[13].mxu0 }
 0x111   :  { %v200_v16 = vadd.f32 %v199_v15, %v1342_v3 }
 0x112   :  { %614 = vst [vmem:[%s1540_s5 + $0x90] sm:$0xff] %v198_v14 }
 0x113   :  { %615 = vst [vmem:[%s1540_s5 + $0x98] sm:$0xff] %v200_v16  ;;  %v203_v18 = vpop.f32.mrb[14].mxu0 }
 0x114   :  { %v204_v19 = vadd.f32 %v203_v18, %v1338_v32  ;;  %v205_v20 = vpop.f32.mrb[15].mxu0 }
 0x115   :  { %v206_v22 = vadd.f32 %v205_v20, %v1342_v3 }
 0x116   :  { %617 = vst [vmem:[%s1540_s5 + $0xa8] sm:$0xff] %v204_v19 }
 0x117   :  { %618 = vst [vmem:[%s1540_s5 + $0xb0] sm:$0xff] %v206_v22  ;;  %v444_v24 = vpop.f32.mrb[16].mxu0 }
 0x118   :  { %v445_v25 = vadd.f32 %v444_v24, %v1433_v21  ;;  %v446_v26 = vpop.f32.mrb[17].mxu0 }
 0x119   :  { %v447_v28 = vadd.f32 %v446_v26, %v1438_v23 }
 0x11a   :  { %620 = vst [vmem:[%s1542_s6] sm:$0xff] %v445_v25 }
 0x11b   :  { %621 = vst [vmem:[%s1542_s6 + $0x8] sm:$0xff] %v447_v28  ;;  %v450_v29 = vpop.f32.mrb[18].mxu0 }
 0x11c   :  { %v451_v30 = vadd.f32 %v450_v29, %v1433_v21  ;;  %v452_v31 = vpop.f32.mrb[19].mxu0 }
 0x11d   :  { %v453_v32 = vadd.f32 %v452_v31, %v1438_v23  ;;  %v778_v3 = vpop.f32.mrb[8].mxu1 }
 0x11e   :  { %623 = vst [vmem:[%s1542_s6 + $0x18] sm:$0xff] %v451_v30  ;;  %v563_v34 = vadd.f32 %v778_v3, %v374_v41  ;;  %v557_v35 = vpop.f32.mrb[9].mxu1 }
 0x11f   :  { %624 = vst [vmem:[%s1542_s6 + $0x20] sm:$0xff] %v453_v32  ;;  %v456_v27 = vpop.f32.mrb[20].mxu0  ;;  %v558_v33 = vadd.f32 %v557_v35, %v374_v41 }
 0x120   :  { %v457_v36 = vadd.f32 %v456_v27, %v1433_v21  ;;  %v458_v37 = vpop.f32.mrb[21].mxu0  ;;  %625 = vst [vmem:[%s1542_s6 + $0x28] sm:$0xff] %v563_v34 }
 0x121   :  { %v459_v38 = vadd.f32 %v458_v37, %v1438_v23  ;;  %622 = vst [vmem:[%s1542_s6 + $0x10] sm:$0xff] %v558_v33  ;;  %v781_v39 = vpop.f32.mrb[10].mxu1 }
 0x122   :  { %626 = vst [vmem:[%s1542_s6 + $0x30] sm:$0xff] %v457_v36  ;;  %v573_v40 = vadd.f32 %v781_v39, %v374_v41  ;;  %v567_v42 = vpop.f32.mrb[11].mxu1 }
 0x123   :  { %627 = vst [vmem:[%s1542_s6 + $0x38] sm:$0xff] %v459_v38  ;;  %v462_v43 = vpop.f32.mrb[22].mxu0  ;;  %v568_v44 = vadd.f32 %v567_v42, %v374_v41 }
 0x124   :  { %v463_v45 = vadd.f32 %v462_v43, %v1433_v21  ;;  %v464_v46 = vpop.f32.mrb[23].mxu0  ;;  %631 = vst [vmem:[%s1542_s6 + $0x58] sm:$0xff] %v573_v40 }
 0x125   :  { %v465_v47 = vadd.f32 %v464_v46, %v1438_v23  ;;  %628 = vst [vmem:[%s1542_s6 + $0x40] sm:$0xff] %v568_v44  ;;  %v784_v48 = vpop.f32.mrb[12].mxu1 }
 0x126   :  { %629 = vst [vmem:[%s1542_s6 + $0x48] sm:$0xff] %v463_v45  ;;  %v583_v49 = vadd.f32 %v784_v48, %v374_v41  ;;  %v577_v50 = vpop.f32.mrb[13].mxu1 }
 0x127   :  { %630 = vst [vmem:[%s1542_s6 + $0x50] sm:$0xff] %v465_v47  ;;  %v468_v51 = vpop.f32.mrb[24].mxu0  ;;  %v578_v52 = vadd.f32 %v577_v50, %v374_v41 }
 0x128   :  { %v469_v53 = vadd.f32 %v468_v51, %v1433_v21  ;;  %v470_v54 = vpop.f32.mrb[25].mxu0  ;;  %637 = vst [vmem:[%s1542_s6 + $0x88] sm:$0xff] %v583_v49 }
 0x129   :  { %v471_v55 = vadd.f32 %v470_v54, %v1438_v23  ;;  %634 = vst [vmem:[%s1542_s6 + $0x70] sm:$0xff] %v578_v52  ;;  %v787_v56 = vpop.f32.mrb[14].mxu1 }
 0x12a   :  { %632 = vst [vmem:[%s1542_s6 + $0x60] sm:$0xff] %v469_v53  ;;  %v593_v57 = vadd.f32 %v787_v56, %v374_v41  ;;  %v587_v58 = vpop.f32.mrb[15].mxu1 }
 0x12b   :  { %633 = vst [vmem:[%s1542_s6 + $0x68] sm:$0xff] %v471_v55  ;;  %v474_v59 = vpop.f32.mrb[26].mxu0  ;;  %v588_v60 = vadd.f32 %v587_v58, %v374_v41 }
 0x12c   :  { %v475_v61 = vadd.f32 %v474_v59, %v1433_v21  ;;  %v476_v62 = vpop.f32.mrb[27].mxu0  ;;  %643 = vst [vmem:[%s1542_s6 + $0xb8] sm:$0xff] %v593_v57 }
 0x12d   :  { %v477_v63 = vadd.f32 %v476_v62, %v1438_v23  ;;  %640 = vst [vmem:[%s1542_s6 + $0xa0] sm:$0xff] %v588_v60 }
 0x12e   :  { %635 = vst [vmem:[%s1542_s6 + $0x78] sm:$0xff] %v475_v61 }
 0x12f   :  { %636 = vst [vmem:[%s1542_s6 + $0x80] sm:$0xff] %v477_v63  ;;  %v480_v0 = vpop.f32.mrb[28].mxu0 }
 0x130   :  { %v481_v1 = vadd.f32 %v480_v0, %v1433_v21  ;;  %v482_v2 = vpop.f32.mrb[29].mxu0 }
 0x131   :  { %v483_v4 = vadd.f32 %v482_v2, %v1438_v23 }
 0x132   :  { %638 = vst [vmem:[%s1542_s6 + $0x90] sm:$0xff] %v481_v1 }
 0x133   :  { %639 = vst [vmem:[%s1542_s6 + $0x98] sm:$0xff] %v483_v4  ;;  %v486_v5 = vpop.f32.mrb[30].mxu0 }
 0x134   :  { %v487_v6 = vadd.f32 %v486_v5, %v1433_v21  ;;  %v488_v7 = vpop.f32.mrb[31].mxu0 }
 0x135   :  { %v489_v8 = vadd.f32 %v488_v7, %v1438_v23 }
 0x136   :  { %641 = vst [vmem:[%s1542_s6 + $0xa8] sm:$0xff] %v487_v6 }
 0x137   :  { %642 = vst [vmem:[%s1542_s6 + $0xb0] sm:$0xff] %v489_v8 }

// kernel: encoder_rnn_forward.3
= control target key start
LH: loop header
LB: loop body
LE: loop exit
PB: predicated region body
PF: predicated region fallthrough
CT: control target
= control target key end

     0   :  { %v1162_v3 = vmov 0.0   ;;  %s1638_s0 = inlined_call_operand.vmem [shape: s32[8,1], index: 0, kind: input, shape index: {}]   ;;  %s1639_s2 = inlined_call_operand.vmem [shape: f32[64,384], index: 2, kind: input, shape index: {}]   ;;  %s1640_s3 = inlined_call_operand.vmem [shape: f32[128,384], index: 3, kind: input, shape index: {}]   ;;  %s1641_s4 = inlined_call_operand.vmem [shape: f32[128,384], index: 4, kind: input, shape index: {}]   ;;  %s1642_s5 = inlined_call_operand.vmem [shape: f32[1,128], index: 5, kind: input, shape index: {}]   ;;  %s1643_s6 = inlined_call_operand.vmem [shape: f32[1,128], index: 6, kind: input, shape index: {}]   ;;  %s1644_s7 = inlined_call_operand.vmem [shape: f32[8,8,128], index: 7, kind: output, shape index: {0}]   ;;  %s1645_s8 = inlined_call_operand.vmem [shape: f32[2,8,128], index: 8, kind: output, shape index: {1}]   ;;  %s1646_s1 = inlined_call_operand.vmem [shape: f32[64,384], index: 1, kind: input, shape index: {}]  }
   0x1   :  { %v1216_v0 = vld [vmem:[%s1638_s0] sm:$0xff]  ;;  %28 = vst [vmem:[#allocation5] sm:$0xff] %v1162_v3  ;;  %29 = vst [vmem:[#allocation6] sm:$0xff] %v1162_v3  ;;  %v70_v5 = vld [vmem:[%s1646_s1 + $0x8] sm:$0xff] }
   0x2   :  { %v1221_v1 = vld [vmem:[%s1642_s5] ss:$0 sm:$0xff]  ;;  %v72_v6 = vld [vmem:[%s1646_s1 + $0x10] sm:$0xff]  ;;  %71 = vst [vmem:[#allocation2 + $0x8] sm:$0xff] %v70_v5 }
   0x3   :  { %v1226_v2 = vld [vmem:[%s1643_s6] ss:$0 sm:$0xff]  ;;  %73 = vst [vmem:[#allocation2 + $0x10] sm:$0xff] %v72_v6 }
   0x4   :  { %v68_v4 = vld [vmem:[%s1646_s1] sm:$0xff] }
   0x5   :  { %69 = vst [vmem:[#allocation2] sm:$0xff] %v68_v4 }
   0x6   :  { %81 = vsyncadd [#allocation4], 384  ;;  %v860_v7 = vld [vmem:[%s1639_s2 + $0xa8] sm:$0xff]  ;;  %v861_v8 = vld [vmem:[%s1639_s2 + $0xb0] sm:$0xff] }
   0x7   :  { %121 = vst [vmem:[#allocation3] sm:$0xff] %v860_v7  ;;  %123 = vst [vmem:[#allocation3 + $0x8] sm:$0xff] %v861_v8  ;;  %v862_v9 = vld [vmem:[%s1639_s2 + $0xb8] sm:$0xff] }
   0x8   :  { %125 = vst [vmem:[#allocation3 + $0x10] sm:$0xff] %v862_v9 }
   0x9   :  { %133 = vsyncadd [#allocation4 + $0x2], 384  ;;  %s1154_s20 = smov 0  }
   0xa LB: > { %s864_s21 = sshll.u32 %s1156_s20, 3  ;;  %v1163_v10 = vmov 0.0   ;;  %s139_s20 = sadd.s32 1, %s1156_s20   ;;  %s1156_s20 = sphi %s1154_s20, %s139_s20  }
   0xb   : > { %s141_s24 = scalar_lea.vmem %s1644_s7, %s864_s21  ;;  %p136_p0 = scmp.ge.s32.totalorder %s139_s20, 8  }
   0xc   : > { %142 = vst [vmem:[%s141_s24] sm:$0xff] %v1163_v10  ;;  %s1249_s25 = smov (%p136_p0), 0  }
   0xd   :  { %138 = sbr.rel (!%p136_p0) target bundleno = 10 (0xa), region = 254 }
  0x14 LB: > { %s1255_s26 = sand.u32 1, %s1160_s25  ;;  %s150_s27 = ssub.s32 7, %s1160_s25  ;;  %s1160_s25 = sphi %s1249_s25, %s1648_s25  }
  0x15   : > { %s883_s28 = smul.u32 24, %s1255_s26  ;;  %s154_s30 = scalar_lea.sflag [#allocation4], %s1255_s26 }
  0x17   : > { %s1259_s29 = scalar_lea.vmem [#allocation2], %s883_s28 }
  0x18   : > { %1150 = dma.done.wait %s154_s30, 384 }
  0x19   : > { %1151 = vsyncadd %s154_s30, 4294966912  ;;  %s802_s9 = scalar_lea.sflag %s154_s30, 2 [#allocation4]  ;;  %s1262_s10 = scalar_lea.vmem [#allocation3], %s883_s28 }
  0x1a   : > { %1152 = dma.done.wait %s802_s9, 384 }
  0x1b   : > { %1153 = vsyncadd %s802_s9, 4294966912  ;;  %s165_s11 = sadd.s32 1, %s1160_s25  }
  0x1c   : > { %p1267_p1 = scmp.ge.s32.totalorder %s165_s11, 8 }
  0x1d   : > { %s170_s13 = ssub.s32 (!%p1267_p1), 1, %s1255_s26  ;;  %s171_s0 = ssub.s32 (!%p1267_p1), 6, %s1160_s25 }
  0x1e   : > { %169 = sbr.rel (%p1267_p1) target bundleno = 47 (0x2f), region = 107  ;;  %s885_s14 = sshll.u32 (!%p1267_p1), %s1160_s25, 3 }
  0x1f   : > { %s869_s15 = sshll.u32 (!%p1267_p1), %s171_s0, 3  ;;  %s886_s5 = sadd.s32 (!%p1267_p1), 8, %s885_s14 }
  0x20   : > { %s888_s6 = smul.u32 (!%p1267_p1), 24, %s170_s13  ;;  %s176_s16 = sshra.s32 (!%p1267_p1), %s886_s5, 3 }
  0x21   : > { %s887_s17 = smul.u32 (!%p1267_p1), 24, %s176_s16  ;;  %s184_s22 = scalar_lea.sflag (!%p1267_p1), [#allocation4], %s170_s13 }
  0x22   : > { %s183_s21 = scalar_lea.vmem (!%p1267_p1), [#allocation2], %s888_s6 }
  0x23   : > { %s180_s20 = scalar_lea.vmem (!%p1267_p1), %s1646_s1, %s887_s17 }
  0x24   : > { %v217_v11 = vld [vmem:[%s180_s20] sm:$0xff] (!%p1267_p1)  ;;  %v219_v12 = vld [vmem:[%s180_s20 + $0x8] sm:$0xff] (!%p1267_p1)  ;;  %v221_v13 = vld [vmem:[%s180_s20 + $0x10] sm:$0xff] (!%p1267_p1) }
  0x25   : > { %218 = vst [vmem:[%s183_s21] sm:$0xff] %v217_v11  ;;  %220 = vst [vmem:[%s183_s21 + $0x8] sm:$0xff] %v219_v12 }
  0x26   : > { %222 = vst [vmem:[%s183_s21 + $0x10] sm:$0xff] %v221_v13 }
  0x27   : > { %230 = vsyncadd %s184_s22, 384  ;;  %s231_s23 = sshra.s32 %s869_s15, 3  ;;  %s813_s26 = scalar_lea.sflag %s184_s22, 2 [#allocation4] }
  0x28   : > { %s889_s24 = smul.u32 24, %s231_s23  ;;  %s237_s0 = scalar_lea.vmem [#allocation3], %s888_s6 }
  0x2a   : > { %s235_s9 = scalar_lea.vmem %s1639_s2, %s889_s24 }
  0x2b   : > { %v272_v14 = vld [vmem:[%s235_s9] sm:$0xff]  ;;  %v274_v15 = vld [vmem:[%s235_s9 + $0x8] sm:$0xff]  ;;  %v276_v16 = vld [vmem:[%s235_s9 + $0x10] sm:$0xff] }
  0x2c   : > { %273 = vst [vmem:[%s237_s0] sm:$0xff] %v272_v14  ;;  %275 = vst [vmem:[%s237_s0 + $0x8] sm:$0xff] %v274_v15 }
  0x2d   : > { %277 = vst [vmem:[%s237_s0 + $0x10] sm:$0xff] %v276_v16 }
  0x2e   : > { %285 = vsyncadd %s813_s26, 384 }
  0x2f PF: > { %v289_v17 = vld [vmem:[%s1640_s3 + $0x8] sm:$0xff]  ;;  %v292_v18 = vld [vmem:[%s1640_s3 + $0x20] sm:$0xff]  ;;  %v672_v20 = vstv %s1160_s25  ;;  %v291_v22 = vld [vmem:[%s1640_s3 + $0x18] sm:$0xff]  ;;  %v1164_v25 = vmov 0.0|0.0   ;;  %v1165_v26 = vmov 0.0   ;;  %vm1166_vm1 = vmmov 0  }
  0x30   : > { %v288_v19 = vld [vmem:[%s1640_s3] sm:$0xff]  ;;  %v995_v21 = vpack.c.bf16 %v292_v18, %v289_v17  ;;  %v295_v23 = vld [vmem:[%s1640_s3 + $0x38] sm:$0xff]  ;;  %v298_v24 = vld [vmem:[%s1640_s3 + $0x50] sm:$0xff]  ;;  %1027 = vmatprep.subr.bf16.mxu1 %v1164_v25  ;;  %400 = vmatprep.mubr.f32.mxu0 %v1165_v26  ;;  %vm673_vm0 = vcmp.lt.s32.totalorder %v672_v20, %v1216_v0  ;;  %v674_v27 = vstv %s150_s27  ;;  %v1167_v33 = vmov 0   ;;  %s876_s13 = sshll.u32 %s1160_s25, 3  ;;  %s1648_s25 = smov %s165_s11 }
  0x31   : > { %v997_v28 = vpack.c.bf16 %v291_v22, %v288_v19  ;;  %v999_v29 = vpack.c.bf16 %v298_v24, %v295_v23  ;;  %v294_v30 = vld [vmem:[%s1640_s3 + $0x30] sm:$0xff]  ;;  %v297_v31 = vld [vmem:[%s1640_s3 + $0x48] sm:$0xff]  ;;  %957 = vmatprep.mubr.msk.f32.mxu1 %vm1166_vm1, %v1165_v26  ;;  %1129 = vset.pattern.permute.xlu0 %v1167_v33  ;;  %v700_v34 = vsel %vm673_vm0, 1, %v1167_v33  ;;  %vm675_vm2 = vcmp.lt.s32.totalorder %v674_v27, %v1216_v0  ;;  %v304_v35 = vld [vmem:[%s1640_s3 + $0x80] sm:$0xff]  ;;  %s739_s17 = scalar_lea.vmem %s1644_s7, %s876_s13 }
  0x32   : > { %v301_v32 = vld [vmem:[%s1640_s3 + $0x68] sm:$0xff]  ;;  %996 = vmatprep.subr.bf16.mxu0 %v995_v21  ;;  %702 = vperm.xlu0 %1129, %v700_v34   ;;  %v1001_v36 = vpack.c.bf16 %v297_v31, %v294_v30  ;;  %v730_v37 = vsel %vm675_vm2, 1, %v1167_v33  ;;  %v300_v39 = vld [vmem:[%s1640_s3 + $0x60] sm:$0xff]  ;;  %v303_v40 = vld [vmem:[%s1640_s3 + $0x78] sm:$0xff] }
  0x33   : > { %998 = vmatpush1.bf16.msra.mxu0 %v997_v28  ;;  %v1003_v38 = vpack.c.bf16 %v304_v35, %v301_v32  ;;  %v307_v41 = vld [vmem:[%s1640_s3 + $0x98] sm:$0xff]  ;;  %v310_v42 = vld [vmem:[%s1640_s3 + $0xb0] sm:$0xff]  ;;  %v293_v44 = vld [vmem:[%s1640_s3 + $0x28] sm:$0xff]  ;;  %v1005_v45 = vpack.c.bf16 %v303_v40, %v300_v39 }
  0x34   : > { %1000 = vmatprep.subr.bf16.mxu0 %v999_v29  ;;  %v290_v43 = vld [vmem:[%s1640_s3 + $0x10] sm:$0xff]  ;;  %v296_v47 = vld [vmem:[%s1640_s3 + $0x40] sm:$0xff]  ;;  %v1007_v48 = vpack.c.bf16 %v310_v42, %v307_v41  ;;  %v309_v50 = vld [vmem:[%s1640_s3 + $0xa8] sm:$0xff] }
  0x35   : > { %v1028_v46 = vpack.c.bf16 %v293_v44, %v290_v43  ;;  %v306_v49 = vld [vmem:[%s1640_s3 + $0x90] sm:$0xff]  ;;  %v299_v51 = vld [vmem:[%s1640_s3 + $0x58] sm:$0xff]  ;;  %v313_v52 = vld [vmem:[%s1640_s3 + $0xc8] sm:$0xff] }
  0x36   : > { %732 = vperm.xlu0 %1129, %v730_v37   ;;  %v316_v53 = vld [vmem:[%s1640_s3 + $0xe0] sm:$0xff]  ;;  %v1031_v54 = vpack.c.bf16 %v299_v51, %v296_v47  ;;  %v302_v55 = vld [vmem:[%s1640_s3 + $0x70] sm:$0xff]  ;;  %v305_v56 = vld [vmem:[%s1640_s3 + $0x88] sm:$0xff]  ;;  %v1009_v57 = vpack.c.bf16 %v309_v50, %v306_v49 }
  0x37   : > { %1002 = vmatpush1.bf16.msra.mxu0 %v1001_v36  ;;  %1029 = vmatpush3.bf16.msra.mxu1 %v1028_v46  ;;  %v1011_v58 = vpack.c.bf16 %v316_v53, %v313_v52  ;;  %v312_v59 = vld [vmem:[%s1640_s3 + $0xc0] sm:$0xff]  ;;  %v315_v60 = vld [vmem:[%s1640_s3 + $0xd8] sm:$0xff]  ;;  %v322_v62 = vld [vmem:[%s1640_s3 + $0x110] sm:$0xff]  ;;  %v1034_v63 = vpack.c.bf16 %v305_v56, %v302_v55 }
  0x38   : > { %1004 = vmatprep.subr.bf16.mxu0 %v1003_v38  ;;  %1030 = vmatprep.subr.bf16.mxu1 %v1164_v25  ;;  %v319_v61 = vld [vmem:[%s1640_s3 + $0xf8] sm:$0xff]  ;;  %v308_v3 = vld [vmem:[%s1640_s3 + $0xa0] sm:$0xff]  ;;  %v1013_v5 = vpack.c.bf16 %v315_v60, %v312_v59  ;;  %v318_v7 = vld [vmem:[%s1640_s3 + $0xf0] sm:$0xff] }
  0x39   : > { %v311_v4 = vld [vmem:[%s1640_s3 + $0xb8] sm:$0xff]  ;;  %v1015_v6 = vpack.c.bf16 %v322_v62, %v319_v61  ;;  %v321_v8 = vld [vmem:[%s1640_s3 + $0x108] sm:$0xff]  ;;  %v328_v10 = vld [vmem:[%s1640_s3 + $0x140] sm:$0xff] }
  0x3a   : > { %v325_v9 = vld [vmem:[%s1640_s3 + $0x128] sm:$0xff]  ;;  %v1037_v11 = vpack.c.bf16 %v311_v4, %v308_v3  ;;  %v314_v12 = vld [vmem:[%s1640_s3 + $0xd0] sm:$0xff]  ;;  %v1017_v14 = vpack.c.bf16 %v321_v8, %v318_v7  ;;  %v324_v16 = vld [vmem:[%s1640_s3 + $0x120] sm:$0xff] }
  0x3b   : > { %1006 = vmatpush1.bf16.msra.mxu0 %v1005_v45  ;;  %1032 = vmatpush3.bf16.msra.mxu1 %v1031_v54  ;;  %v317_v13 = vld [vmem:[%s1640_s3 + $0xe8] sm:$0xff]  ;;  %v1019_v15 = vpack.c.bf16 %v328_v10, %v325_v9  ;;  %v327_v17 = vld [vmem:[%s1640_s3 + $0x138] sm:$0xff]  ;;  %v334_v19 = vld [vmem:[%s1640_s3 + $0x170] sm:$0xff] }
  0x3c   : > { %1008 = vmatprep.subr.bf16.mxu0 %v1007_v48  ;;  %1033 = vmatprep.subr.bf16.mxu1 %v1164_v25  ;;  %v331_v18 = vld [vmem:[%s1640_s3 + $0x158] sm:$0xff]  ;;  %v1040_v20 = vpack.c.bf16 %v317_v13, %v314_v12  ;;  %v320_v21 = vld [vmem:[%s1640_s3 + $0x100] sm:$0xff]  ;;  %v1021_v23 = vpack.c.bf16 %v327_v17, %v324_v16  ;;  %v330_v27 = vld [vmem:[%s1640_s3 + $0x150] sm:$0xff] }
  0x3d   : > { %v323_v22 = vld [vmem:[%s1640_s3 + $0x118] sm:$0xff]  ;;  %v1023_v24 = vpack.c.bf16 %v334_v19, %v331_v18  ;;  %v333_v28 = vld [vmem:[%s1640_s3 + $0x168] sm:$0xff]  ;;  %v481_v30 = vld [vmem:[%s1641_s4 + $0x20] sm:$0xff] }
  0x3e   : > { %v478_v29 = vld [vmem:[%s1641_s4 + $0x8] sm:$0xff]  ;;  %v1043_v31 = vpack.c.bf16 %v323_v22, %v320_v21  ;;  %v326_v32 = vld [vmem:[%s1640_s3 + $0x130] sm:$0xff]  ;;  %v1025_v34 = vpack.c.bf16 %v333_v28, %v330_v27  ;;  %v477_v36 = vld [vmem:[%s1641_s4] sm:$0xff] }
  0x3f   : > { %1010 = vmatpush1.bf16.msra.mxu0 %v1009_v57  ;;  %1035 = vmatpush3.bf16.msra.mxu1 %v1034_v63  ;;  %v329_v33 = vld [vmem:[%s1640_s3 + $0x148] sm:$0xff]  ;;  %v1051_v35 = vpack.c.bf16 %v481_v30, %v478_v29  ;;  %v480_v37 = vld [vmem:[%s1641_s4 + $0x18] sm:$0xff]  ;;  %v487_v39 = vld [vmem:[%s1641_s4 + $0x50] sm:$0xff] }
  0x40   : > { %1012 = vmatprep.subr.bf16.mxu0 %v1011_v58  ;;  %1036 = vmatprep.subr.bf16.mxu1 %v1164_v25  ;;  %v484_v38 = vld [vmem:[%s1641_s4 + $0x38] sm:$0xff]  ;;  %v1046_v40 = vpack.c.bf16 %v329_v33, %v326_v32  ;;  %v332_v41 = vld [vmem:[%s1640_s3 + $0x160] sm:$0xff]  ;;  %v1053_v44 = vpack.c.bf16 %v480_v37, %v477_v36  ;;  %v483_v46 = vld [vmem:[%s1641_s4 + $0x30] sm:$0xff] }
  0x41   : > { %v335_v42 = vld [vmem:[%s1640_s3 + $0x178] sm:$0xff]  ;;  %v1459_v43 = vld [vmem:[#allocation5] sm:$0xff]  ;;  %v1055_v45 = vpack.c.bf16 %v487_v39, %v484_v38  ;;  %v486_v47 = vld [vmem:[%s1641_s4 + $0x48] sm:$0xff] }
  0x42   : > { %v490_v48 = vld [vmem:[%s1641_s4 + $0x68] sm:$0xff]  ;;  %v493_v49 = vld [vmem:[%s1641_s4 + $0x80] sm:$0xff]  ;;  %v1049_v50 = vpack.c.bf16 %v335_v42, %v332_v41  ;;  %v479_v51 = vld [vmem:[%s1641_s4 + $0x10] sm:$0xff]  ;;  %v1057_v53 = vpack.c.bf16 %v486_v47, %v483_v46 }
  0x43   : > { %1014 = vmatpush1.bf16.msra.mxu0 %v1013_v5  ;;  %1038 = vmatpush3.bf16.msra.mxu1 %v1037_v11  ;;  %v482_v52 = vld [vmem:[%s1641_s4 + $0x28] sm:$0xff]  ;;  %v1059_v54 = vpack.c.bf16 %v493_v49, %v490_v48  ;;  %v489_v55 = vld [vmem:[%s1641_s4 + $0x60] sm:$0xff]  ;;  %v492_v56 = vld [vmem:[%s1641_s4 + $0x78] sm:$0xff] }
  0x44   : > { %1016 = vmatprep.subr.bf16.mxu0 %v1015_v6  ;;  %1039 = vmatprep.subr.bf16.mxu1 %v1164_v25  ;;  %v496_v57 = vld [vmem:[%s1641_s4 + $0x98] sm:$0xff]  ;;  %v499_v58 = vld [vmem:[%s1641_s4 + $0xb0] sm:$0xff]  ;;  %v1084_v59 = vpack.c.bf16 %v482_v52, %v479_v51  ;;  %v485_v60 = vld [vmem:[%s1641_s4 + $0x40] sm:$0xff]  ;;  %v1061_v62 = vpack.c.bf16 %v492_v56, %v489_v55 }
  0x45   : > { %v488_v61 = vld [vmem:[%s1641_s4 + $0x58] sm:$0xff]  ;;  %v1063_v63 = vpack.c.bf16 %v499_v58, %v496_v57  ;;  %v495_v3 = vld [vmem:[%s1641_s4 + $0x90] sm:$0xff]  ;;  %v498_v4 = vld [vmem:[%s1641_s4 + $0xa8] sm:$0xff] }
  0x46   : > { %v502_v5 = vld [vmem:[%s1641_s4 + $0xc8] sm:$0xff]  ;;  %v505_v6 = vld [vmem:[%s1641_s4 + $0xe0] sm:$0xff]  ;;  %v1087_v7 = vpack.c.bf16 %v488_v61, %v485_v60  ;;  %v491_v8 = vld [vmem:[%s1641_s4 + $0x70] sm:$0xff]  ;;  %v1065_v10 = vpack.c.bf16 %v498_v4, %v495_v3 }
  0x47   : > { %1018 = vmatpush1.bf16.msra.mxu0 %v1017_v14  ;;  %1041 = vmatpush3.bf16.msra.mxu1 %v1040_v20  ;;  %v494_v9 = vld [vmem:[%s1641_s4 + $0x88] sm:$0xff]  ;;  %v1067_v11 = vpack.c.bf16 %v505_v6, %v502_v5  ;;  %v501_v12 = vld [vmem:[%s1641_s4 + $0xc0] sm:$0xff]  ;;  %v508_v13 = vld [vmem:[%s1641_s4 + $0xf8] sm:$0xff] }
  0x48   : > { %1020 = vmatprep.subr.bf16.mxu0 %v1019_v15  ;;  %1042 = vmatprep.subr.bf16.mxu1 %v1164_v25  ;;  %v511_v14 = vld [vmem:[%s1641_s4 + $0x110] sm:$0xff]  ;;  %v1090_v15 = vpack.c.bf16 %v494_v9, %v491_v8  ;;  %v497_v16 = vld [vmem:[%s1641_s4 + $0xa0] sm:$0xff]  ;;  %v500_v17 = vld [vmem:[%s1641_s4 + $0xb8] sm:$0xff] }
  0x49   : > { %v1071_v19 = vpack.c.bf16 %v511_v14, %v508_v13  ;;  %v507_v20 = vld [vmem:[%s1641_s4 + $0xf0] sm:$0xff]  ;;  %v510_v21 = vld [vmem:[%s1641_s4 + $0x108] sm:$0xff]  ;;  %v516_v32 = vld [vmem:[%s1641_s4 + $0x138] sm:$0xff] }
  0x4a   : > { %v514_v22 = vld [vmem:[%s1641_s4 + $0x128] sm:$0xff]  ;;  %v503_v27 = vld [vmem:[%s1641_s4 + $0xd0] sm:$0xff]  ;;  %v1073_v29 = vpack.c.bf16 %v510_v21, %v507_v20  ;;  %v520_v33 = vld [vmem:[%s1641_s4 + $0x158] sm:$0xff] }
  0x4b   : > { %1022 = vmatpush1.bf16.msra.mxu0 %v1021_v23  ;;  %1044 = vmatpush3.bf16.msra.mxu1 %v1043_v31  ;;  %v517_v23 = vld [vmem:[%s1641_s4 + $0x140] sm:$0xff]  ;;  %v506_v28 = vld [vmem:[%s1641_s4 + $0xe8] sm:$0xff]  ;;  %v512_v37 = vld [vmem:[%s1641_s4 + $0x118] sm:$0xff] }
  0x4c   : > { %1024 = vmatprep.subr.bf16.mxu0 %v1023_v24  ;;  %1045 = vmatprep.subr.bf16.mxu1 %v1164_v25  ;;  %v1093_v24 = vpack.c.bf16 %v500_v17, %v497_v16  ;;  %v1075_v30 = vpack.c.bf16 %v517_v23, %v514_v22  ;;  %v513_v31 = vld [vmem:[%s1641_s4 + $0x120] sm:$0xff]  ;;  %v522_v41 = vld [vmem:[%s1641_s4 + $0x168] sm:$0xff]  ;;  %v524_v49 = vld [vmem:[%s1641_s4 + $0x178] sm:$0xff] }
  0x4d   : > { %v509_v36 = vld [vmem:[%s1641_s4 + $0x100] sm:$0xff]  ;;  %v1077_v38 = vpack.c.bf16 %v516_v32, %v513_v31  ;;  %v668_v4 = vld [vmem:[%s1259_s29 + $0x10] sm:$0xff]  ;;  %v670_v14 = vld [vmem:[%s1262_s10 + $0x8] sm:$0xff] }
  0x4e   : > { %v1099_v42 = vpack.c.bf16 %v512_v37, %v509_v36  ;;  %v521_v48 = vld [vmem:[%s1641_s4 + $0x160] sm:$0xff] }
  0x4f   : > { %1026 = vmatpush1.bf16.msra.mxu0 %v1025_v34  ;;  %1047 = vmatpush3.bf16.msra.mxu1 %v1046_v40  ;;  %v523_v34 = vld [vmem:[%s1641_s4 + $0x170] sm:$0xff]  ;;  %v1105_v51 = vpack.c.bf16 %v524_v49, %v521_v48  ;;  %v666_v52 = vld [vmem:[%s1259_s29] sm:$0xff]  ;;  %v667_v56 = vld [vmem:[%s1259_s29 + $0x8] sm:$0xff]  ;;  %s877_s29 = sshll.u32 %s150_s27, 3 }
  0x50   : > { %1052 = vmatprep.subr.bf16.mxu0 %v1051_v35  ;;  %1048 = vmatprep.subr.bf16.mxu1 %v1164_v25  ;;  %v1096_v35 = vpack.c.bf16 %v506_v28, %v503_v27  ;;  %v1079_v39 = vpack.c.bf16 %v523_v34, %v520_v33  ;;  %v519_v40 = vld [vmem:[%s1641_s4 + $0x150] sm:$0xff]  ;;  %v740_v21 = vld [vmem:[%s739_s17] sm:$0xff]  ;;  %s745_s19 = scalar_lea.vmem %s1644_s7, %s877_s29 }
  0x51   : > { %v1081_v46 = vpack.c.bf16 %v522_v41, %v519_v40 }
  0x52   : > { %401 = vmatmul.mubr.f32.vlgmr.msra.gmra.mrb[0].mxu0 %v1459_v43 }
  0x53   : > { %1054 = vmatpush1.bf16.msra.mxu0 %v1053_v44  ;;  %589 = vmatprep.mubr.f32.mxu0 %v1165_v26  ;;  %v515_v44 = vld [vmem:[%s1641_s4 + $0x130] sm:$0xff] }
  0x54   : > { %1056 = vmatprep.subr.bf16.mxu0 %v1055_v45  ;;  %1050 = vmatpush3.bf16.msra.mxu1 %v1049_v50  ;;  %v518_v45 = vld [vmem:[%s1641_s4 + $0x148] sm:$0xff] }
  0x55   : > { %1083 = vmatprep.subr.bf16.mxu1 %v1164_v25  ;;  %v1102_v47 = vpack.c.bf16 %v518_v45, %v515_v44  ;;  %v1600_v50 = vld [vmem:[#allocation6] sm:$0xff] }
  0x57   : > { %1058 = vmatpush1.bf16.msra.mxu0 %v1057_v53  ;;  %958 = vmatmul.mubr.f32.vlgmr.msra.gmra.mrb[0].mxu1 %v1459_v43 }
  0x58   : > { %1060 = vmatprep.subr.bf16.mxu0 %v1059_v54  ;;  %1085 = vmatpush3.bf16.msra.mxu1 %v1084_v59 }
  0x59   : > { %992 = vmatprep.mubr.msk.f32.mxu1 %vm1166_vm1, %v1165_v26  ;;  %1086 = vmatprep.subr.bf16.mxu1 %v1164_v25  ;;  %v504_v26 = vld [vmem:[%s1641_s4 + $0xd8] sm:$0xff] }
  0x5a   : > { %v1069_v18 = vpack.c.bf16 %v504_v26, %v501_v12 }
  0x5b   : > { %1062 = vmatpush1.bf16.msra.mxu0 %v1061_v62 }
  0x5c   : > { %1064 = vmatprep.subr.bf16.mxu0 %v1063_v63  ;;  %1088 = vmatpush3.bf16.msra.mxu1 %v1087_v7 }
  0x5d   : > { %1089 = vmatprep.subr.bf16.mxu1 %v1164_v25 }
  0x5f   : > { %1066 = vmatpush1.bf16.msra.mxu0 %v1065_v10  ;;  %v669_v10 = vld [vmem:[%s1262_s10] sm:$0xff] }
  0x60   : > { %1068 = vmatprep.subr.bf16.mxu0 %v1067_v11  ;;  %1091 = vmatpush3.bf16.msra.mxu1 %v1090_v15 }
  0x61   : > { %1092 = vmatprep.subr.bf16.mxu1 %v1164_v25 }
  0x63   : > { %1070 = vmatpush1.bf16.msra.mxu0 %v1069_v18 }
  0x64   : > { %1072 = vmatprep.subr.bf16.mxu0 %v1071_v19  ;;  %1094 = vmatpush3.bf16.msra.mxu1 %v1093_v24 }
  0x65   : > { %1095 = vmatprep.subr.bf16.mxu1 %v1164_v25 }
  0x67   : > { %1074 = vmatpush1.bf16.msra.mxu0 %v1073_v29 }
  0x68   : > { %1076 = vmatprep.subr.bf16.mxu0 %v1075_v30  ;;  %1097 = vmatpush3.bf16.msra.mxu1 %v1096_v35  ;;  %v671_v35 = vld [vmem:[%s1262_s10 + $0x10] sm:$0xff] }
  0x69   : > { %1098 = vmatprep.subr.bf16.mxu1 %v1164_v25 }
  0x6b   : > { %1078 = vmatpush1.bf16.msra.mxu0 %v1077_v38 }
  0x6c   : > { %1080 = vmatprep.subr.bf16.mxu0 %v1079_v39  ;;  %1100 = vmatpush3.bf16.msra.mxu1 %v1099_v42 }
  0x6d   : > { %1101 = vmatprep.subr.bf16.mxu1 %v1164_v25 }
  0x6f   : > { %1082 = vmatpush1.bf16.msra.mxu0 %v1081_v46 }
  0x70   : > { %1103 = vmatpush3.bf16.msra.mxu1 %v1102_v47 }
  0x71   : > { %1104 = vmatprep.subr.bf16.mxu1 %v1164_v25 }
  0x72   : > { %590 = vmatmul.mubr.f32.vlgmr.msra.gmra.mrb[2].mxu0 %v1600_v50 }
  0x74   : > { %1106 = vmatpush3.bf16.msra.mxu1 %v1105_v51 }
  0x77   : > { %993 = vmatmul.mubr.f32.vlgmr.msra.gmra.mrb[2].mxu1 %v1600_v50 }
  0xb1   : > { %v703_v15 = vpop.permute.xlu0 %702 }
  0xb2   : > { %vm704_vm3 = vcmp.eq.s32.totalorder %v703_v15, 1 }
  0xb5   : > { %v733_v42 = vpop.permute.xlu0 %732 }
  0xb6   : > { %vm734_vm4 = vcmp.eq.s32.totalorder %v733_v42, 1 }
 0x125   : > { %v402_v53 = vpop.f32.mrb[0].mxu0 }
 0x126   : > { %v676_v54 = vadd.f32 %v666_v52, %v402_v53  ;;  %v404_v55 = vpop.f32.mrb[1].mxu0 }
 0x127   : > { %v681_v58 = vadd.f32 %v667_v56, %v404_v55 }
 0x128   : > { %v677_v57 = vmul.f32 0.5, %v676_v54 }
 0x129   : > { %v682_v61 = vmul.f32 0.5, %v681_v58 }
 0x12a   : > { %1130 = vtanh.f32 %v677_v57  ;;  %v473_v59 = vpop.f32.mrb[0].mxu1 }
 0x12b   : > { %v959_v60 = vpop.f32.mrb[1].mxu1  ;;  %1132 = vtanh.f32 %v682_v61  ;;  %v692_v63 = vadd.f32 %v1221_v1, %v473_v59 }
 0x134   : > { %v1131_v62 = vpop.eup %1130 }
 0x135   : > { %v679_v25 = vmul.f32 0.5, %v1131_v62  ;;  %v1133_v6 = vpop.eup %1132 }
 0x136   : > { %v684_v8 = vmul.f32 0.5, %v1133_v6 }
 0x137   : > { %v680_v3 = vadd.f32 0.5, %v679_v25 }
 0x138   : > { %v685_v9 = vadd.f32 0.5, %v684_v8 }
 0x139   : > { %v693_v5 = vmul.f32 %v692_v63, %v680_v3 }
 0x13a   : > { %v696_v12 = vsub.f32 1.0, %v685_v9  ;;  %v698_v19 = vmul.f32 %v685_v9, %v1459_v43 }
 0x13b   : > { %v694_v7 = vadd.f32 %v693_v5, %v668_v4 }
 0x13d   : > { %1134 = vtanh.f32 %v694_v7 }
 0x145   : > { %v591_v11 = vpop.f32.mrb[2].mxu0 }
 0x146   : > { %v706_v26 = vadd.f32 %v669_v10, %v591_v11  ;;  %v593_v13 = vpop.f32.mrb[3].mxu0 }
 0x147   : > { %v1135_v16 = vpop.eup %1134  ;;  %v711_v20 = vadd.f32 %v670_v14, %v593_v13 }
 0x148   : > { %v707_v17 = vmul.f32 0.5, %v706_v26  ;;  %v697_v18 = vmul.f32 %v1135_v16, %v696_v12 }
 0x149   : > { %v712_v29 = vmul.f32 0.5, %v711_v20 }
 0x14a   : > { %1136 = vtanh.f32 %v707_v17  ;;  %v699_v22 = vadd.f32 %v698_v19, %v697_v18  ;;  %v662_v23 = vpop.f32.mrb[2].mxu1 }
 0x14b   : > { %v994_v28 = vpop.f32.mrb[3].mxu1  ;;  %1138 = vtanh.f32 %v712_v29  ;;  %v722_v33 = vadd.f32 %v1226_v2, %v662_v23 }
 0x14c   : > { %v705_v24 = vsel %vm704_vm3, %v699_v22, %v1459_v43  ;;  %v741_v27 = vsel %vm704_vm3, %v699_v22, 0.0 }
 0x14d   : > { %736 = vst [vmem:[#allocation5] sm:$0xff] %v705_v24  ;;  %v742_v30 = vadd.f32 %v741_v27, %v740_v21 }
 0x14f   : > { %743 = vst [vmem:[%s739_s17] sm:$0xff] %v742_v30 }
 0x154   : > { %v1137_v31 = vpop.eup %1136  ;;  %v750_v52 = vld [vmem:[#allocation5] sm:$0xff] (%p1267_p1) }
 0x155   : > { %v709_v32 = vmul.f32 0.5, %v1137_v31  ;;  %v1139_v37 = vpop.eup %1138  ;;  %751 = vst [vmem:[%s1645_s8] sm:$0xff] (%p1267_p1), %v750_v52 }
 0x156   : > { %v714_v39 = vmul.f32 0.5, %v1139_v37  ;;  %v746_v48 = vld [vmem:[%s745_s19] sm:$0xff] }
 0x157   : > { %v710_v34 = vadd.f32 0.5, %v709_v32 }
 0x158   : > { %v715_v43 = vadd.f32 0.5, %v714_v39 }
 0x159   : > { %v723_v36 = vmul.f32 %v722_v33, %v710_v34 }
 0x15a   : > { %v726_v40 = vsub.f32 1.0, %v715_v43  ;;  %v728_v45 = vmul.f32 %v715_v43, %v1600_v50 }
 0x15b   : > { %v724_v38 = vadd.f32 %v723_v36, %v671_v35 }
 0x15d   : > { %1140 = vtanh.f32 %v724_v38 }
 0x167   : > { %v1141_v41 = vpop.eup %1140 }
 0x168   : > { %v727_v44 = vmul.f32 %v1141_v41, %v726_v40 }
 0x169   :  { %147 = sbr.rel (!%p1267_p1) target bundleno = 20 (0x14), region = 265 }
 0x16a   : > { %v729_v46 = vadd.f32 %v728_v45, %v727_v44 }
 0x16c   : > { %v735_v47 = vsel %vm734_vm4, %v729_v46, %v1600_v50  ;;  %v747_v49 = vsel %vm734_vm4, %v729_v46, 0.0 }
 0x16d   : > { %737 = vst [vmem:[#allocation6] sm:$0xff] %v735_v47  ;;  %v748_v51 = vadd.f32 %v747_v49, %v746_v48 }
 0x16f   : > { %749 = vst [vmem:[%s745_s19] sm:$0xff] %v748_v51 }
 0x174   :  { %v752_v53 = vld [vmem:[#allocation6] sm:$0xff] }
 0x175   :  { %878 = vst [vmem:[%s1645_s8 + $0x8] sm:$0xff] %v752_v53 }
 0x176   :  { %763 = vsyncmov [#allocation4] }
 0x179   :  { %s764_s22 = vpop.sfrf %763 }
 0x17a   :  { %p879_p2 = scmp.ne.s32.totalorder %s764_s22, 0 }
 0x17c   :  { %768 = shalt.err (%p879_p2)  }
 0x17d   :  { %770 = vsyncmov [#allocation4 + $0x1] }
 0x180   :  { %s771_s25 = vpop.sfrf %770 }
 0x181   :  { %p880_p3 = scmp.ne.s32.totalorder %s771_s25, 0 }
 0x183   :  { %775 = shalt.err (%p880_p3)  }
 0x184   :  { %777 = vsyncmov [#allocation4 + $0x2] }
 0x187   :  { %s778_s11 = vpop.sfrf %777 }
 0x188   :  { %p881_p4 = scmp.ne.s32.totalorder %s778_s11, 0 }
 0x18a   :  { %782 = shalt.err (%p881_p4)  }
 0x18b   :  { %784 = vsyncmov [#allocation4 + $0x3] }
 0x18e   :  { %s785_s1 = vpop.sfrf %784 }
 0x18f   :  { %p882_p5 = scmp.ne.s32.totalorder %s785_s1, 0 }
 0x191   :  { %789 = shalt.err (%p882_p5)  }

</bundles_post_ra>
